<compile_context>
chip_gen: v7x
topology: tpu7x:2x2x1
jax: 0.10.0
libtpu: 0.0.40
codegen_flags: <defaults>
</compile_context>

<pallas_src>
import jax
import jax.numpy as jnp
from jax.experimental import pallas as pl
from jax.experimental.pallas import tpu as pltpu


# ----------------------------------------------------------------------------
# Kernels
# ----------------------------------------------------------------------------
def _fused_gather_mlp_kernel(idx_ref, wh_ref, bin_ref,
                             w1_ref, b1_ref, w2_ref, b2_ref,
                             out_ref):
    """Gather + Win fused into one one-hot matmul, then W1 / W2.

    idx_ref : [2, tE] int32 -- row 0 = src ids, row 1 = dst ids of this tile.
    wh_ref  : [2H, 2N]      -- [ Win[:, :F] @ h.T | Win[:, F:] @ h.T ].
    out_ref : [O, tE]       -- lane-dense scores (edges on the lane axis).
    """
    cdt = wh_ref.dtype
    n = wh_ref.shape[1] // 2
    te = idx_ref.shape[1]

    node_iota = jax.lax.broadcasted_iota(jnp.int32, (n, te), 0)        # [N, tE]
    # bool -> compute dtype directly (exact for 0/1; no f32 round-trip).
    # Out-of-range ids (>= N) yield an all-zero column (silent zeros).
    onehot_s = (node_iota == idx_ref[0:1, :]).astype(cdt)              # [N, tE]
    onehot_d = (node_iota == idx_ref[1:2, :]).astype(cdt)              # [N, tE]
    onehot = jnp.concatenate([onehot_s, onehot_d], axis=0)             # [2N, tE]

    # Layer Win fused with the gather: a single [2H, 2N] @ [2N, tE] push.
    h1 = jnp.dot(wh_ref[...], onehot,
                 preferred_element_type=jnp.float32) + bin_ref[...]
    h1 = jnp.maximum(h1, 0.0).astype(cdt)                              # [2H, tE]

    # Layer W1.
    h2 = jnp.dot(w1_ref[...], h1,
                 preferred_element_type=jnp.float32) + b1_ref[...]
    h2 = jnp.maximum(h2, 0.0).astype(cdt)                              # [H, tE]

    # Layer W2.
    out = jnp.dot(w2_ref[...], h2,
                  preferred_element_type=jnp.float32) + b2_ref[...]
    out_ref[...] = out.astype(out_ref.dtype)                           # [O, tE]


def _pregathered_mlp_kernel(hs_ref, hd_ref,
                            wa_ref, wb_ref, bin_ref,
                            w1_ref, b1_ref, w2_ref, b2_ref,
                            out_ref):
    """Fallback for node tables too large to keep resident in VMEM:
    src/dst features are pre-gathered in the wrapper and streamed as
    transposed [F, tE] tiles."""
    cdt = wa_ref.dtype
    h1 = (jnp.dot(wa_ref[...], hs_ref[...], preferred_element_type=jnp.float32)
          + jnp.dot(wb_ref[...], hd_ref[...], preferred_element_type=jnp.float32)
          + bin_ref[...])
    h1 = jnp.maximum(h1, 0.0).astype(cdt)
    h2 = jnp.dot(w1_ref[...], h1,
                 preferred_element_type=jnp.float32) + b1_ref[...]
    h2 = jnp.maximum(h2, 0.0).astype(cdt)
    out = jnp.dot(w2_ref[...], h2,
                  preferred_element_type=jnp.float32) + b2_ref[...]
    out_ref[...] = out.astype(out_ref.dtype)


# ----------------------------------------------------------------------------
# Per-generation tuning helpers
# ----------------------------------------------------------------------------
def _vmem_budget_bytes():
    """~80% of this generation's per-TensorCore VMEM.  Falls back to the
    smallest modern value (v7x: 64 MiB/TC) when the query is unavailable,
    so the budget is always safe."""
    cap = 64 << 20
    try:
        cap = int(pltpu.get_tpu_info().vmem_capacity_bytes)
    except Exception:
        pass
    return int(0.8 * cap)


def _default_max_gather_nodes():
    """Crossover between the in-kernel one-hot gather (VPU compares ~2*N per
    edge, doesn't shrink with the Wh fusion) and streaming pre-gathered
    features from HBM.  v7x's ~3.2 TB/s HBM makes streaming win at smaller N
    than on v5e/v6e (which also have 2x the VMEM for the resident table)."""
    try:
        kind = jax.devices()[0].device_kind.lower()
    except Exception:
        kind = ""
    return 4096 if "v7" in kind else 8192


# ----------------------------------------------------------------------------
# Wrapper
# ----------------------------------------------------------------------------
def no_gnn_mlp_predictor(h, src, dst, params, *, tile_e=1024,
                         compute_dtype=jnp.bfloat16,
                         max_gather_nodes=None,
                         use_buffered_invariants=True):
    """Per-edge scores, matching NoGNNMLPPredictor.forward.

    h      : [N, inp_feats] node features (f32)
    src/dst: [E] int32 edge endpoints
    params : torch-Linear-layout weights ([out, in]) and biases:
             win_w [2H, 2F], win_b [2H], w1_w [H, 2H], w1_b [H],
             w2_w [2, H],  w2_b [2]
    returns: [E, 2] f32 scores
    """
    assert tile_e % 128 == 0, "tile_e must be a multiple of 128 (lane width)"

    N, F = h.shape
    E = src.shape[0]
    win_w, w1_w, w2_w = params["win_w"], params["w1_w"], params["w2_w"]
    H2 = win_w.shape[0]          # 2 * h_feats
    H = w1_w.shape[0]            # h_feats
    O = w2_w.shape[0]            # 2

    cdt = compute_dtype
    elt = jnp.dtype(cdt).itemsize

    if max_gather_nodes is None:
        max_gather_nodes = _default_max_gather_nodes()
    budget = _vmem_budget_bytes()

    # Biases stay f32 (added to the f32 accumulators); W1/W2 in compute dtype.
    b_in = params["win_b"].reshape(H2, 1).astype(jnp.float32)
    b1 = params["w1_b"].reshape(H, 1).astype(jnp.float32)
    b2 = params["w2_b"].reshape(O, 1).astype(jnp.float32)
    w1 = w1_w.astype(cdt)
    w2 = w2_w.astype(cdt)

    # ---- VMEM accounting; shrink tile_e / switch paths until it fits -------
    def gather_need(te):
        resident = (H2 * 2 * N + H * H2 + O * H) * elt + (H2 + H + O) * 4
        per_step = 2 * te * 4 + O * te * 4                      # idx in + out
        live = te * (N * (4 * elt + 4)                          # one-hots + iota
                     + H2 * (4 + elt) + H * (4 + elt) + O * 4)  # activations
        return 2 * per_step + resident + live

    def fallback_need(te):
        resident = (2 * H2 * F + H * H2 + O * H) * elt + (H2 + H + O) * 4
        per_step = 2 * F * te * elt + O * te * 4
        live = te * (H2 * (4 + elt) + H * (4 + elt) + O * 4)
        return 2 * per_step + resident + live

    use_gather = N <= max_gather_nodes
    need_fn = gather_need if use_gather else fallback_need
    while need_fn(tile_e) > budget and tile_e > 128:
        tile_e //= 2
    if use_gather and gather_need(tile_e) > budget:
        use_gather = False                                # Wh table too big: stream
        while fallback_need(tile_e) > budget and tile_e > 128:
            tile_e //= 2
    assert (gather_need(tile_e) if use_gather else fallback_need(tile_e)) <= budget, \
        "feature dimensions too large for VMEM on this TPU generation"

    # ---- edge padding; single stacked [2, e_pad] index stream --------------
    n_tiles = pl.cdiv(E, tile_e)
    e_pad = n_tiles * tile_e
    pad = e_pad - E
    # Padded edges reference node 0 (valid since N >= 1); their scores are
    # sliced off below.
    idx = jnp.stack([jnp.pad(src.astype(jnp.int32), (0, pad)),
                     jnp.pad(dst.astype(jnp.int32), (0, pad))], axis=0)

    out_spec = pl.BlockSpec((O, tile_e), lambda i: (0, i))          # lane-dense
    idx_spec = pl.BlockSpec((2, tile_e), lambda i: (0, i))

    def invariant_spec(shape, buffered):
        # Grid-invariant operand: constant index_map means no re-DMA per step;
        # Buffered(1) also reclaims the second (double-buffer) VMEM copy.
        if buffered:
            return pl.BlockSpec(shape, lambda i: (0, 0),
                                pipeline_mode=pl.Buffered(1))
        return pl.BlockSpec(shape, lambda i: (0, 0))

    if use_gather:
        # Fuse gather + Win:  Wh = [ Win[:, :F] @ h.T | Win[:, F:] @ h.T ].
        ht = h.astype(jnp.float32).T
        wh = jnp.concatenate(
            [jnp.dot(win_w[:, :F], ht, precision="highest"),
             jnp.dot(win_w[:, F:], ht, precision="highest")],
            axis=1).astype(cdt)                                    # [2H, 2N]
        kernel = _fused_gather_mlp_kernel
        inputs = (idx, wh, b_in, w1, b1, w2, b2)
        stream_specs = [idx_spec]
        inv_shapes = [(H2, 2 * N), (H2, 1), (H, H2), (H, 1), (O, H), (O, 1)]
    else:
        # TODO(synk): replace the wrapper-side gather+transpose with a manual
        # DMA row gather (h kept in pl.ANY/HBM + scalar-prefetched indices) to
        # avoid the extra E*F HBM round-trips on this path.
        wa = win_w[:, :F].astype(cdt)
        wb = win_w[:, F:].astype(cdt)
        kernel = _pregathered_mlp_kernel
        hs_all = jnp.pad(h[src], ((0, pad), (0, 0))).T.astype(cdt)  # [F, e_pad]
        hd_all = jnp.pad(h[dst], ((0, pad), (0, 0))).T.astype(cdt)  # [F, e_pad]
        feat_spec = pl.BlockSpec((F, tile_e), lambda i: (0, i))
        inputs = (hs_all, hd_all, wa, wb, b_in, w1, b1, w2, b2)
        stream_specs = [feat_spec, feat_spec]
        inv_shapes = [(H2, F), (H2, F), (H2, 1), (H, H2), (H, 1), (O, H), (O, 1)]

    def run(buffered):
        in_specs = stream_specs + [invariant_spec(s, buffered) for s in inv_shapes]
        return pl.pallas_call(
            kernel,
            out_shape=jax.ShapeDtypeStruct((O, e_pad), jnp.float32),
            grid_spec=pltpu.PrefetchScalarGridSpec(
                num_scalar_prefetch=0,
                grid=(n_tiles,),
                in_specs=in_specs,
                out_specs=out_spec,
            ),
            compiler_params=pltpu.CompilerParams(
                dimension_semantics=("parallel",),
                vmem_limit_bytes=budget),
        )(*inputs)

    if use_buffered_invariants:
        try:
            out_t = run(True)
        except Exception:
            # pipeline_mode=Buffered(1) not supported on this jax version.
            out_t = run(False)
    else:
        out_t = run(False)

    return out_t[:, :E].T                                           # [E, 2]


# ----------------------------------------------------------------------------
# Reference + synthetic init
# ----------------------------------------------------------------------------
def _init_params(key, inp_feats, h_feats):
    """Deterministic synthetic init (torch nn.Linear layout: W is [out, in])."""
    ks = jax.random.split(key, 6)

    def lin(kw, kb, fan_in, fan_out):
        bound = 1.0 / jnp.sqrt(jnp.float32(fan_in))
        w = jax.random.uniform(kw, (fan_out, fan_in), jnp.float32, -bound, bound)
        b = jax.random.uniform(kb, (fan_out,), jnp.float32, -bound, bound)
        return w, b

    win_w, win_b = lin(ks[0], ks[1], inp_feats * 2, 2 * h_feats)
    w1_w, w1_b = lin(ks[2], ks[3], 2 * h_feats, h_feats)
    w2_w, w2_b = lin(ks[4], ks[5], h_feats, 2)
    return dict(win_w=win_w, win_b=win_b, w1_w=w1_w, w1_b=w1_b,
                w2_w=w2_w, w2_b=w2_b)


def _reference(h, src, dst, p):
    """Pure-JAX reference matching the PyTorch module."""
    x = jnp.concatenate([h[src], h[dst]], axis=1)
    h1 = jnp.maximum(x @ p["win_w"].T + p["win_b"], 0.0)
    h2 = jnp.maximum(h1 @ p["w1_w"].T + p["w1_b"], 0.0)
    return h2 @ p["w2_w"].T + p["w2_b"]


if __name__ == "__main__":
    key = jax.random.PRNGKey(0)
    k_h, k_src, k_dst, k_par = jax.random.split(key, 4)

    num_nodes = 16
    inp_feats = 8
    h_feats = 32
    num_edges = 1000           # deliberately NOT a multiple of tile_e

    h = jax.random.normal(k_h, (num_nodes, inp_feats), jnp.float32)
    src = jax.random.randint(k_src, (num_edges,), 0, num_nodes, jnp.int32)
    dst = jax.random.randint(k_dst, (num_edges,), 0, num_nodes, jnp.int32)
    params = _init_params(k_par, inp_feats, h_feats)

    ref = _reference(h, src, dst, params)

    # 1) f32 compute path (fused Wh @ one-hot gather, lane-dense output).
    s_f32 = jax.block_until_ready(
        no_gnn_mlp_predictor(h, src, dst, params, compute_dtype=jnp.float32))
    assert s_f32.shape == (num_edges, 2)
    assert jnp.allclose(s_f32, ref, atol=1e-3, rtol=1e-3), "f32 kernel mismatch"

    # 2) default bf16 weights (f32 accumulation) — looser tolerance.
    s_bf16 = jax.block_until_ready(no_gnn_mlp_predictor(h, src, dst, params))
    assert s_bf16.shape == (num_edges, 2)
    assert jnp.allclose(s_bf16, ref, atol=3e-2, rtol=3e-2), "bf16 kernel mismatch"

    # 3) exercise the large-graph streaming fallback (wrapper-side gather).
    s_fb = jax.block_until_ready(
        no_gnn_mlp_predictor(h, src, dst, params, compute_dtype=jnp.float32,
                             max_gather_nodes=0))
    assert jnp.allclose(s_fb, ref, atol=1e-3, rtol=1e-3), "fallback kernel mismatch"

    print("KERNEL_OK")
</pallas_src>

<mosaic_0001>
module attributes {stable_mosaic.version = 11 : i64} {
  func.func @_fused_gather_mlp_kernel(%arg0: i32, %arg1: memref<2x1024xi32, #tpu.memory_space<vmem>>, %arg2: memref<64x32xf32, #tpu.memory_space<vmem>>, %arg3: memref<64x1xf32, #tpu.memory_space<vmem>>, %arg4: memref<32x64xf32, #tpu.memory_space<vmem>>, %arg5: memref<32x1xf32, #tpu.memory_space<vmem>>, %arg6: memref<2x32xf32, #tpu.memory_space<vmem>>, %arg7: memref<2x1xf32, #tpu.memory_space<vmem>>, %arg8: memref<2x1024xf32, #tpu.memory_space<vmem>>) attributes {dimension_semantics = [#tpu.dimension_semantics<parallel>], iteration_bounds = array<i64: 1>, scalar_prefetch = 0 : i64, scratch_operands = 0 : i64, tpu.core_type = #tpu.core_type<tc>, window_params = [{transform_indices = @transform_0, window_bounds = array<i64: 2, 1024>}, {pipeline_mode = #tpu.pipeline_mode<synchronous>, transform_indices = @transform_1, window_bounds = array<i64: 64, 32>}, {pipeline_mode = #tpu.pipeline_mode<synchronous>, transform_indices = @transform_2, window_bounds = array<i64: 64, 1>}, {pipeline_mode = #tpu.pipeline_mode<synchronous>, transform_indices = @transform_3, window_bounds = array<i64: 32, 64>}, {pipeline_mode = #tpu.pipeline_mode<synchronous>, transform_indices = @transform_4, window_bounds = array<i64: 32, 1>}, {pipeline_mode = #tpu.pipeline_mode<synchronous>, transform_indices = @transform_5, window_bounds = array<i64: 2, 32>}, {pipeline_mode = #tpu.pipeline_mode<synchronous>, transform_indices = @transform_6, window_bounds = array<i64: 2, 1>}, {transform_indices = @transform_7, window_bounds = array<i64: 2, 1024>}]} {
    %0 = tpu.iota {dimensions = array<i32: 0>} : vector<16x1024xi32>
    %c0 = arith.constant 0 : index
    %c0_0 = arith.constant 0 : index
    %1 = vector.load %arg1[%c0, %c0_0] : memref<2x1024xi32, #tpu.memory_space<vmem>>, vector<1x1024xi32>
    %2 = vector.broadcast %1 : vector<1x1024xi32> to vector<16x1024xi32>
    %3 = arith.cmpi eq, %0, %2 : vector<16x1024xi32>
    %4 = arith.extui %3 : vector<16x1024xi1> to vector<16x1024xi32>
    %5 = arith.sitofp %4 : vector<16x1024xi32> to vector<16x1024xf32>
    %c1 = arith.constant 1 : index
    %c0_1 = arith.constant 0 : index
    %6 = vector.load %arg1[%c1, %c0_1] : memref<2x1024xi32, #tpu.memory_space<vmem>>, vector<1x1024xi32>
    %7 = vector.broadcast %6 : vector<1x1024xi32> to vector<16x1024xi32>
    %8 = arith.cmpi eq, %0, %7 : vector<16x1024xi32>
    %9 = arith.extui %8 : vector<16x1024xi1> to vector<16x1024xi32>
    %10 = arith.sitofp %9 : vector<16x1024xi32> to vector<16x1024xf32>
    %11 = tpu.concatenate %5, %10 in 0 : vector<16x1024xf32>, vector<16x1024xf32> -> vector<32x1024xf32>
    %c0_2 = arith.constant 0 : index
    %c0_3 = arith.constant 0 : index
    %12 = vector.load %arg2[%c0_2, %c0_3] : memref<64x32xf32, #tpu.memory_space<vmem>>, vector<64x32xf32>
    %cst = arith.constant dense<0.000000e+00> : vector<64x1024xf32>
    %13 = tpu.matmul %12, %11, %cst {dimension_numbers = #tpu.dot_dimension_numbers<[1], [0], [0], [1], [0, 0, 1, 1], [], []>} : vector<64x32xf32>, vector<32x1024xf32>, vector<64x1024xf32> -> vector<64x1024xf32>
    %c0_4 = arith.constant 0 : index
    %c0_5 = arith.constant 0 : index
    %14 = vector.load %arg3[%c0_4, %c0_5] : memref<64x1xf32, #tpu.memory_space<vmem>>, vector<64x1xf32>
    %15 = vector.broadcast %14 : vector<64x1xf32> to vector<64x1024xf32>
    %16 = arith.addf %13, %15 : vector<64x1024xf32>
    %cst_6 = arith.constant 0.000000e+00 : f32
    %17 = vector.broadcast %cst_6 : f32 to vector<64x1024xf32>
    %18 = arith.maximumf %16, %17 : vector<64x1024xf32>
    %c0_7 = arith.constant 0 : index
    %c0_8 = arith.constant 0 : index
    %19 = vector.load %arg4[%c0_7, %c0_8] : memref<32x64xf32, #tpu.memory_space<vmem>>, vector<32x64xf32>
    %cst_9 = arith.constant dense<0.000000e+00> : vector<32x1024xf32>
    %20 = tpu.matmul %19, %18, %cst_9 {dimension_numbers = #tpu.dot_dimension_numbers<[1], [0], [0], [1], [0, 0, 1, 1], [], []>} : vector<32x64xf32>, vector<64x1024xf32>, vector<32x1024xf32> -> vector<32x1024xf32>
    %c0_10 = arith.constant 0 : index
    %c0_11 = arith.constant 0 : index
    %21 = vector.load %arg5[%c0_10, %c0_11] : memref<32x1xf32, #tpu.memory_space<vmem>>, vector<32x1xf32>
    %22 = vector.broadcast %21 : vector<32x1xf32> to vector<32x1024xf32>
    %23 = arith.addf %20, %22 : vector<32x1024xf32>
    %cst_12 = arith.constant 0.000000e+00 : f32
    %24 = vector.broadcast %cst_12 : f32 to vector<32x1024xf32>
    %25 = arith.maximumf %23, %24 : vector<32x1024xf32>
    %c0_13 = arith.constant 0 : index
    %c0_14 = arith.constant 0 : index
    %26 = vector.load %arg6[%c0_13, %c0_14] : memref<2x32xf32, #tpu.memory_space<vmem>>, vector<2x32xf32>
    %cst_15 = arith.constant dense<0.000000e+00> : vector<2x1024xf32>
    %27 = tpu.matmul %26, %25, %cst_15 {dimension_numbers = #tpu.dot_dimension_numbers<[1], [0], [0], [1], [0, 0, 1, 1], [], []>} : vector<2x32xf32>, vector<32x1024xf32>, vector<2x1024xf32> -> vector<2x1024xf32>
    %c0_16 = arith.constant 0 : index
    %c0_17 = arith.constant 0 : index
    %28 = vector.load %arg7[%c0_16, %c0_17] : memref<2x1xf32, #tpu.memory_space<vmem>>, vector<2x1xf32>
    %29 = vector.broadcast %28 : vector<2x1xf32> to vector<2x1024xf32>
    %30 = arith.addf %27, %29 : vector<2x1024xf32>
    %c0_18 = arith.constant 0 : index
    %c0_19 = arith.constant 0 : index
    %31 = vector.load %arg8[%c0_18, %c0_19] : memref<2x1024xf32, #tpu.memory_space<vmem>>, vector<2x1024xf32>
    tpu.vector_store %arg8[%c0_18, %c0_19], %30 {strides = array<i32>} : memref<2x1024xf32, #tpu.memory_space<vmem>>, vector<2x1024xf32>,
    return
  }
  func.func @transform_0(%arg0: i32) -> (i32, i32) {
    %c0_i32 = arith.constant 0 : i32
    %c0_i32_0 = arith.constant 0 : i32
    return %c0_i32, %arg0 : i32, i32
  }
  func.func @transform_1(%arg0: i32) -> (i32, i32) {
    %c0_i32 = arith.constant 0 : i32
    %c0_i32_0 = arith.constant 0 : i32
    %c0_i32_1 = arith.constant 0 : i32
    return %c0_i32, %c0_i32_0 : i32, i32
  }
  func.func @transform_2(%arg0: i32) -> (i32, i32) {
    %c0_i32 = arith.constant 0 : i32
    %c0_i32_0 = arith.constant 0 : i32
    %c0_i32_1 = arith.constant 0 : i32
    return %c0_i32, %c0_i32_0 : i32, i32
  }
  func.func @transform_3(%arg0: i32) -> (i32, i32) {
    %c0_i32 = arith.constant 0 : i32
    %c0_i32_0 = arith.constant 0 : i32
    %c0_i32_1 = arith.constant 0 : i32
    return %c0_i32, %c0_i32_0 : i32, i32
  }
  func.func @transform_4(%arg0: i32) -> (i32, i32) {
    %c0_i32 = arith.constant 0 : i32
    %c0_i32_0 = arith.constant 0 : i32
    %c0_i32_1 = arith.constant 0 : i32
    return %c0_i32, %c0_i32_0 : i32, i32
  }
  func.func @transform_5(%arg0: i32) -> (i32, i32) {
    %c0_i32 = arith.constant 0 : i32
    %c0_i32_0 = arith.constant 0 : i32
    %c0_i32_1 = arith.constant 0 : i32
    return %c0_i32, %c0_i32_0 : i32, i32
  }
  func.func @transform_6(%arg0: i32) -> (i32, i32) {
    %c0_i32 = arith.constant 0 : i32
    %c0_i32_0 = arith.constant 0 : i32
    %c0_i32_1 = arith.constant 0 : i32
    return %c0_i32, %c0_i32_0 : i32, i32
  }
  func.func @transform_7(%arg0: i32) -> (i32, i32) {
    %c0_i32 = arith.constant 0 : i32
    %c0_i32_0 = arith.constant 0 : i32
    return %c0_i32, %arg0 : i32, i32
  }
}

module attributes {stable_mosaic.version = 11 : i64} {
  func.func @_fused_gather_mlp_kernel(%arg0: i32, %arg1: memref<2x1024xi32, #tpu.memory_space<vmem>>, %arg2: memref<64x32xf32, #tpu.memory_space<vmem>>, %arg3: memref<64x1xf32, #tpu.memory_space<vmem>>, %arg4: memref<32x64xf32, #tpu.memory_space<vmem>>, %arg5: memref<32x1xf32, #tpu.memory_space<vmem>>, %arg6: memref<2x32xf32, #tpu.memory_space<vmem>>, %arg7: memref<2x1xf32, #tpu.memory_space<vmem>>, %arg8: memref<2x1024xf32, #tpu.memory_space<vmem>>) attributes {dimension_semantics = [#tpu.dimension_semantics<parallel>], iteration_bounds = array<i64: 1>, scalar_prefetch = 0 : i64, scratch_operands = 0 : i64, tpu.core_type = #tpu.core_type<tc>, window_params = [{transform_indices = @transform_0, window_bounds = array<i64: 2, 1024>}, {pipeline_mode = #tpu.pipeline_mode<synchronous>, transform_indices = @transform_1, window_bounds = array<i64: 64, 32>}, {pipeline_mode = #tpu.pipeline_mode<synchronous>, transform_indices = @transform_2, window_bounds = array<i64: 64, 1>}, {pipeline_mode = #tpu.pipeline_mode<synchronous>, transform_indices = @transform_3, window_bounds = array<i64: 32, 64>}, {pipeline_mode = #tpu.pipeline_mode<synchronous>, transform_indices = @transform_4, window_bounds = array<i64: 32, 1>}, {pipeline_mode = #tpu.pipeline_mode<synchronous>, transform_indices = @transform_5, window_bounds = array<i64: 2, 32>}, {pipeline_mode = #tpu.pipeline_mode<synchronous>, transform_indices = @transform_6, window_bounds = array<i64: 2, 1>}, {transform_indices = @transform_7, window_bounds = array<i64: 2, 1024>}]} {
    %0 = tpu.iota {dimensions = array<i32: 0>} : vector<16x1024xi32>
    %c0 = arith.constant 0 : index
    %c0_0 = arith.constant 0 : index
    %1 = vector.load %arg1[%c0, %c0_0] : memref<2x1024xi32, #tpu.memory_space<vmem>>, vector<1x1024xi32>
    %2 = vector.broadcast %1 : vector<1x1024xi32> to vector<16x1024xi32>
    %3 = arith.cmpi eq, %0, %2 : vector<16x1024xi32>
    %4 = arith.extui %3 : vector<16x1024xi1> to vector<16x1024xi32>
    %5 = arith.sitofp %4 : vector<16x1024xi32> to vector<16x1024xf32>
    %c1 = arith.constant 1 : index
    %c0_1 = arith.constant 0 : index
    %6 = vector.load %arg1[%c1, %c0_1] : memref<2x1024xi32, #tpu.memory_space<vmem>>, vector<1x1024xi32>
    %7 = vector.broadcast %6 : vector<1x1024xi32> to vector<16x1024xi32>
    %8 = arith.cmpi eq, %0, %7 : vector<16x1024xi32>
    %9 = arith.extui %8 : vector<16x1024xi1> to vector<16x1024xi32>
    %10 = arith.sitofp %9 : vector<16x1024xi32> to vector<16x1024xf32>
    %11 = tpu.concatenate %5, %10 in 0 : vector<16x1024xf32>, vector<16x1024xf32> -> vector<32x1024xf32>
    %c0_2 = arith.constant 0 : index
    %c0_3 = arith.constant 0 : index
    %12 = vector.load %arg2[%c0_2, %c0_3] : memref<64x32xf32, #tpu.memory_space<vmem>>, vector<64x32xf32>
    %cst = arith.constant dense<0.000000e+00> : vector<64x1024xf32>
    %13 = tpu.matmul %12, %11, %cst {dimension_numbers = #tpu.dot_dimension_numbers<[1], [0], [0], [1], [0, 0, 1, 1], [], []>} : vector<64x32xf32>, vector<32x1024xf32>, vector<64x1024xf32> -> vector<64x1024xf32>
    %c0_4 = arith.constant 0 : index
    %c0_5 = arith.constant 0 : index
    %14 = vector.load %arg3[%c0_4, %c0_5] : memref<64x1xf32, #tpu.memory_space<vmem>>, vector<64x1xf32>
    %15 = vector.broadcast %14 : vector<64x1xf32> to vector<64x1024xf32>
    %16 = arith.addf %13, %15 : vector<64x1024xf32>
    %cst_6 = arith.constant 0.000000e+00 : f32
    %17 = vector.broadcast %cst_6 : f32 to vector<64x1024xf32>
    %18 = arith.maximumf %16, %17 : vector<64x1024xf32>
    %c0_7 = arith.constant 0 : index
    %c0_8 = arith.constant 0 : index
    %19 = vector.load %arg4[%c0_7, %c0_8] : memref<32x64xf32, #tpu.memory_space<vmem>>, vector<32x64xf32>
    %cst_9 = arith.constant dense<0.000000e+00> : vector<32x1024xf32>
    %20 = tpu.matmul %19, %18, %cst_9 {dimension_numbers = #tpu.dot_dimension_numbers<[1], [0], [0], [1], [0, 0, 1, 1], [], []>} : vector<32x64xf32>, vector<64x1024xf32>, vector<32x1024xf32> -> vector<32x1024xf32>
    %c0_10 = arith.constant 0 : index
    %c0_11 = arith.constant 0 : index
    %21 = vector.load %arg5[%c0_10, %c0_11] : memref<32x1xf32, #tpu.memory_space<vmem>>, vector<32x1xf32>
    %22 = vector.broadcast %21 : vector<32x1xf32> to vector<32x1024xf32>
    %23 = arith.addf %20, %22 : vector<32x1024xf32>
    %cst_12 = arith.constant 0.000000e+00 : f32
    %24 = vector.broadcast %cst_12 : f32 to vector<32x1024xf32>
    %25 = arith.maximumf %23, %24 : vector<32x1024xf32>
    %c0_13 = arith.constant 0 : index
    %c0_14 = arith.constant 0 : index
    %26 = vector.load %arg6[%c0_13, %c0_14] : memref<2x32xf32, #tpu.memory_space<vmem>>, vector<2x32xf32>
    %cst_15 = arith.constant dense<0.000000e+00> : vector<2x1024xf32>
    %27 = tpu.matmul %26, %25, %cst_15 {dimension_numbers = #tpu.dot_dimension_numbers<[1], [0], [0], [1], [0, 0, 1, 1], [], []>} : vector<2x32xf32>, vector<32x1024xf32>, vector<2x1024xf32> -> vector<2x1024xf32>
    %c0_16 = arith.constant 0 : index
    %c0_17 = arith.constant 0 : index
    %28 = vector.load %arg7[%c0_16, %c0_17] : memref<2x1xf32, #tpu.memory_space<vmem>>, vector<2x1xf32>
    %29 = vector.broadcast %28 : vector<2x1xf32> to vector<2x1024xf32>
    %30 = arith.addf %27, %29 : vector<2x1024xf32>
    %c0_18 = arith.constant 0 : index
    %c0_19 = arith.constant 0 : index
    %31 = vector.load %arg8[%c0_18, %c0_19] : memref<2x1024xf32, #tpu.memory_space<vmem>>, vector<2x1024xf32>
    tpu.vector_store %arg8[%c0_18, %c0_19], %30 {strides = array<i32>} : memref<2x1024xf32, #tpu.memory_space<vmem>>, vector<2x1024xf32>,
    return
  }
  func.func @transform_0(%arg0: i32) -> (i32, i32) {
    %c0_i32 = arith.constant 0 : i32
    %c0_i32_0 = arith.constant 0 : i32
    return %c0_i32, %arg0 : i32, i32
  }
  func.func @transform_1(%arg0: i32) -> (i32, i32) {
    %c0_i32 = arith.constant 0 : i32
    %c0_i32_0 = arith.constant 0 : i32
    %c0_i32_1 = arith.constant 0 : i32
    return %c0_i32, %c0_i32_0 : i32, i32
  }
  func.func @transform_2(%arg0: i32) -> (i32, i32) {
    %c0_i32 = arith.constant 0 : i32
    %c0_i32_0 = arith.constant 0 : i32
    %c0_i32_1 = arith.constant 0 : i32
    return %c0_i32, %c0_i32_0 : i32, i32
  }
  func.func @transform_3(%arg0: i32) -> (i32, i32) {
    %c0_i32 = arith.constant 0 : i32
    %c0_i32_0 = arith.constant 0 : i32
    %c0_i32_1 = arith.constant 0 : i32
    return %c0_i32, %c0_i32_0 : i32, i32
  }
  func.func @transform_4(%arg0: i32) -> (i32, i32) {
    %c0_i32 = arith.constant 0 : i32
    %c0_i32_0 = arith.constant 0 : i32
    %c0_i32_1 = arith.constant 0 : i32
    return %c0_i32, %c0_i32_0 : i32, i32
  }
  func.func @transform_5(%arg0: i32) -> (i32, i32) {
    %c0_i32 = arith.constant 0 : i32
    %c0_i32_0 = arith.constant 0 : i32
    %c0_i32_1 = arith.constant 0 : i32
    return %c0_i32, %c0_i32_0 : i32, i32
  }
  func.func @transform_6(%arg0: i32) -> (i32, i32) {
    %c0_i32 = arith.constant 0 : i32
    %c0_i32_0 = arith.constant 0 : i32
    %c0_i32_1 = arith.constant 0 : i32
    return %c0_i32, %c0_i32_0 : i32, i32
  }
  func.func @transform_7(%arg0: i32) -> (i32, i32) {
    %c0_i32 = arith.constant 0 : i32
    %c0_i32_0 = arith.constant 0 : i32
    return %c0_i32, %arg0 : i32, i32
  }
}

</mosaic_0001>

<bundles_post_ra>
// kernel: tpu_custom_call.1
= control target key start
LH: loop header
LB: loop body
LE: loop exit
PB: predicated region body
PF: predicated region fallthrough
CT: control target
= control target key end

     0   :  { %v27_v0 = vlaneseq  ;;  %v1849_v3 = vmov 0.0   ;;  %v1850_v5 = vmov 0   ;;  %s2380_s0 = inlined_call_operand.vmem [shape: s32[2,1024], index: 0, kind: input, shape index: {}]   ;;  %s2381_s1 = inlined_call_operand.vmem [shape: f32[64,32], index: 1, kind: input, shape index: {}]   ;;  %s2382_s2 = inlined_call_operand.vmem [shape: f32[64,1], index: 2, kind: input, shape index: {}]   ;;  %s2383_s3 = inlined_call_operand.vmem [shape: f32[32,64], index: 3, kind: input, shape index: {}]   ;;  %s2384_s4 = inlined_call_operand.vmem [shape: f32[32,1], index: 4, kind: input, shape index: {}]   ;;  %s2385_s5 = inlined_call_operand.vmem [shape: f32[2,32], index: 5, kind: input, shape index: {}]   ;;  %s2386_s6 = inlined_call_operand.vmem [shape: f32[2,1], index: 6, kind: input, shape index: {}]   ;;  %s2387_s7 = inlined_call_operand.hbm [shape: f32[2,1024], index: 7, kind: output, shape index: {}]  }
   0x1   :  { %v1899_v2 = vld [vmem:[%s2380_s0] ss:$2 sm:$0xff]  ;;  %338 = vmatprep.mubr.f32.mxu0 %v1849_v3  ;;  %451 = vmatprep.mubr.f32.mxu1 %v1849_v3  ;;  %v1906_v4 = vld [vmem:[%s2380_s0 + $0x1] ss:$2 sm:$0xff]  ;;  %v203_v16 = vld [vmem:[%s2382_s2 + $0x10] sm:$0xff] }
   0x2   :  { %v1894_v1 = vshrl.u32 %v27_v0, 7  ;;  %1823 = vset.pattern.permute.xlu0 %v1850_v5  ;;  %v201_v6 = vld [vmem:[%s2382_s2] sm:$0xff]  ;;  %1824 = vset.pattern.permute.xlu1 %v1850_v5  ;;  %v202_v15 = vld [vmem:[%s2382_s2 + $0x8] sm:$0xff] }
   0x3   :  { %211 = vperm.xlu0 %1823, %v201_v6   ;;  %221 = vperm.xlu1 %1824, %v203_v16  }
   0x4   :  { %v1912_v7 = vadd.s32 8, %v1894_v1  ;;  %v37_v8 = vsub.s32 1, %v1894_v1  ;;  %v45_v9 = vsub.s32 3, %v1894_v1  ;;  %v33_v10 = vsub.s32 0, %v1894_v1 }
   0x5   :  { %v41_v11 = vsub.s32 2, %v1894_v1  ;;  %v53_v12 = vsub.s32 5, %v1894_v1  ;;  %v61_v13 = vsub.s32 7, %v1894_v1  ;;  %v49_v14 = vsub.s32 4, %v1894_v1 }
   0x6   :  { %v38_v17 = vrot.slane %v1899_v2, %v37_v8  ;;  %v46_v18 = vrot.slane %v1899_v2, %v45_v9  ;;  %v34_v19 = vrot.slane %v1899_v2, %v33_v10  ;;  %v120_v20 = vrot.slane %v1906_v4, %v37_v8 }
   0x7   :  { %v42_v21 = vrot.slane %v1899_v2, %v41_v11  ;;  %v128_v22 = vrot.slane %v1906_v4, %v45_v9  ;;  %v116_v23 = vrot.slane %v1906_v4, %v33_v10  ;;  %v124_v24 = vrot.slane %v1906_v4, %v41_v11  ;;  %216 = vperm.xlu0 %1823, %v202_v15  }
   0x8   :  { %vm64_vm0 = vcmp.eq.s32.totalorder %v1894_v1, %v38_v17  ;;  %vm72_vm1 = vcmp.eq.s32.totalorder %v1912_v7, %v38_v17  ;;  %vm66_vm2 = vcmp.eq.s32.totalorder %v1894_v1, %v46_v18  ;;  %vm74_vm3 = vcmp.eq.s32.totalorder %v1912_v7, %v46_v18 }
   0x9   :  { %12 = vsyncpa [#allocation3], 0  ;;  %vm63_vm5 = vcmp.eq.s32.totalorder %v1894_v1, %v34_v19  ;;  %vm71_vm6 = vcmp.eq.s32.totalorder %v1912_v7, %v34_v19  ;;  %vm65_vm7 = vcmp.eq.s32.totalorder %v1894_v1, %v42_v21  ;;  %vm73_vm8 = vcmp.eq.s32.totalorder %v1912_v7, %v42_v21  ;;  %v205_v25 = vld [vmem:[%s2382_s2 + $0x20] sm:$0xff]  ;;  %v204_v27 = vld [vmem:[%s2382_s2 + $0x18] sm:$0xff] }
   0xa   :  { %vm1690_vm4 = vmpackc.low %vm72_vm1, %vm64_vm0  ;;  %v1851_v26 = vmov 1.0|1.0   ;;  %vm146_vm10 = vcmp.eq.s32.totalorder %v1894_v1, %v120_v20  ;;  %vm154_vm11 = vcmp.eq.s32.totalorder %v1912_v7, %v120_v20  ;;  %vm148_vm13 = vcmp.eq.s32.totalorder %v1894_v1, %v128_v22  ;;  %226 = vperm.xlu1 %1824, %v204_v27   ;;  %v207_v35 = vld [vmem:[%s2382_s2 + $0x30] sm:$0xff]  ;;  %v2003_v36 = vld [vmem:[%s2381_s1] sm:$0xff] }
   0xb   :  { %1691 = vmatprep.subr.msk.bf16.mxu0 %vm1690_vm4, %v1851_v26  ;;  %vm1698_vm9 = vmpackc.low %vm74_vm3, %vm66_vm2  ;;  %vm156_vm14 = vcmp.eq.s32.totalorder %v1912_v7, %v128_v22  ;;  %vm145_vm15 = vcmp.eq.s32.totalorder %v1894_v1, %v116_v23  ;;  %vm153_vm0 = vcmp.eq.s32.totalorder %v1912_v7, %v116_v23  ;;  %v54_v28 = vrot.slane %v1899_v2, %v53_v12  ;;  %v2040_v39 = vld [vmem:[%s2381_s1 + $0x8] sm:$0xff]  ;;  %v794_v40 = vld [vmem:[%s2384_s4] sm:$0xff] }
   0xc   :  { %1699 = vmatprep.subr.msk.bf16.mxu1 %vm1698_vm9, %v1851_v26  ;;  %vm1692_vm12 = vmpackc.low %vm71_vm6, %vm63_vm5  ;;  %v62_v29 = vrot.slane %v1899_v2, %v61_v13  ;;  %v50_v30 = vrot.slane %v1899_v2, %v49_v14  ;;  %v57_v31 = vsub.s32 6, %v1894_v1  ;;  %231 = vperm.xlu0 %1823, %v205_v25   ;;  %vm147_vm3 = vcmp.eq.s32.totalorder %v1894_v1, %v124_v24  ;;  %v195_v41 = vld [vmem:[%s2381_s1 + $0x10] sm:$0xff]  ;;  %v206_v42 = vld [vmem:[%s2382_s2 + $0x28] sm:$0xff] }
   0xd   :  { %1693 = vmatpush1.bf16.msk.msra.mxu0 %vm1692_vm12, %v1851_v26  ;;  %vm1700_vm1 = vmpackc.low %vm73_vm8, %vm65_vm7  ;;  %vm155_vm4 = vcmp.eq.s32.totalorder %v1912_v7, %v124_v24  ;;  %vm68_vm6 = vcmp.eq.s32.totalorder %v1894_v1, %v54_v28  ;;  %vm76_vm7 = vcmp.eq.s32.totalorder %v1912_v7, %v54_v28  ;;  %v136_v32 = vrot.slane %v1906_v4, %v53_v12  ;;  %v796_v43 = vld [vmem:[%s2384_s4 + $0x10] sm:$0xff]  ;;  %v196_v44 = vld [vmem:[%s2381_s1 + $0x18] sm:$0xff] }
   0xe   :  { %1701 = vmatpush1.bf16.msk.msra.mxu1 %vm1700_vm1, %v1851_v26  ;;  %vm1694_vm2 = vmpackc.low %vm154_vm11, %vm146_vm10  ;;  %vm70_vm9 = vcmp.eq.s32.totalorder %v1894_v1, %v62_v29  ;;  %vm78_vm10 = vcmp.eq.s32.totalorder %v1912_v7, %v62_v29  ;;  %v58_v33 = vrot.slane %v1899_v2, %v57_v31  ;;  %v144_v34 = vrot.slane %v1906_v4, %v61_v13  ;;  %v208_v45 = vld [vmem:[%s2382_s2 + $0x38] sm:$0xff]  ;;  %v1220_v46 = vld [vmem:[%s2386_s6] sm:$0x3] }
   0xf   :  { %1695 = vmatprep.subr.msk.bf16.mxu0 %vm1694_vm2, %v1851_v26  ;;  %vm1702_vm5 = vmpackc.low %vm156_vm14, %vm148_vm13  ;;  %vm249_vm12 = vcmask 261120   ;;  %vm67_vm13 = vcmp.eq.s32.totalorder %v1894_v1, %v50_v30  ;;  %vm75_vm14 = vcmp.eq.s32.totalorder %v1912_v7, %v50_v30  ;;  %v132_v37 = vrot.slane %v1906_v4, %v49_v14  ;;  %236 = vperm.xlu1 %1824, %v206_v42   ;;  %v197_v47 = vld [vmem:[%s2381_s1 + $0x20] sm:$0xff]  ;;  %v795_v48 = vld [vmem:[%s2384_s4 + $0x8] sm:$0xff] }
  0x10   :  { %1703 = vmatprep.subr.msk.bf16.mxu1 %vm1702_vm5, %v1851_v26  ;;  %vm1696_vm8 = vmpackc.low %vm153_vm0, %vm145_vm15  ;;  %vm69_vm0 = vcmp.eq.s32.totalorder %v1894_v1, %v58_v33  ;;  %vm77_vm1 = vcmp.eq.s32.totalorder %v1912_v7, %v58_v33  ;;  %v140_v38 = vrot.slane %v1906_v4, %v57_v31  ;;  %241 = vperm.xlu0 %1823, %v207_v35   ;;  %v198_v49 = vld [vmem:[%s2381_s1 + $0x28] sm:$0xff]  ;;  %v797_v50 = vld [vmem:[%s2384_s4 + $0x18] sm:$0xff] }
  0x11   :  { %1697 = vmatpush1.bf16.msk.msra.mxu0 %vm1696_vm8, %v1851_v26  ;;  %vm1704_vm11 = vmpackc.low %vm155_vm4, %vm147_vm3  ;;  %vm150_vm3 = vcmp.eq.s32.totalorder %v1894_v1, %v136_v32  ;;  %vm158_vm4 = vcmp.eq.s32.totalorder %v1912_v7, %v136_v32  ;;  %v199_v51 = vld [vmem:[%s2381_s1 + $0x30] sm:$0xff]  ;;  %v200_v52 = vld [vmem:[%s2381_s1 + $0x38] sm:$0xff] }
  0x12   :  { %1705 = vmatpush1.bf16.msk.msra.mxu1 %vm1704_vm11, %v1851_v26  ;;  %vm1706_vm15 = vmpackc.low %vm76_vm7, %vm68_vm6  ;;  %vm152_vm6 = vcmp.eq.s32.totalorder %v1894_v1, %v144_v34  ;;  %vm160_vm7 = vcmp.eq.s32.totalorder %v1912_v7, %v144_v34 }
  0x13   :  { %1707 = vmatprep.subr.msk.bf16.mxu0 %vm1706_vm15, %v1851_v26  ;;  %vm1714_vm2 = vmpackc.low %vm78_vm10, %vm70_vm9  ;;  %vm149_vm9 = vcmp.eq.s32.totalorder %v1894_v1, %v132_v37  ;;  %vm157_vm10 = vcmp.eq.s32.totalorder %v1912_v7, %v132_v37  ;;  %246 = vperm.xlu1 %1824, %v208_v45  }
  0x14   :  { %1614 = vmatmul.mubr.msk.f32.vlgmr.msra.gmra.mrb[0].mxu0 %vm249_vm12, %v2003_v36  ;;  %1715 = vmatprep.subr.msk.bf16.mxu1 %vm1714_vm2, %v1851_v26  ;;  %vm1708_vm5 = vmpackc.low %vm75_vm14, %vm67_vm13  ;;  %vm151_vm13 = vcmp.eq.s32.totalorder %v1894_v1, %v140_v38  ;;  %vm159_vm14 = vcmp.eq.s32.totalorder %v1912_v7, %v140_v38  ;;  %vm818_vm2 = vcmask 523264  }
  0x15   :  { %1630 = vmatmul.mubr.msk.f32.vlgmr.msra.gmra.mrb[0].mxu1 %vm249_vm12, %v2003_v36  ;;  %1709 = vmatpush1.bf16.msk.msra.mxu0 %vm1708_vm5, %v1851_v26  ;;  %vm1716_vm8 = vmpackc.low %vm77_vm1, %vm69_vm0 }
  0x16   :  { %1717 = vmatpush1.bf16.msk.msra.mxu1 %vm1716_vm8, %v1851_v26  ;;  %344 = vmatprep.mubr.f32.mxu0 %v1849_v3  ;;  %vm1710_vm11 = vmpackc.low %vm158_vm4, %vm150_vm3 }
  0x17   :  { %457 = vmatprep.mubr.f32.mxu1 %v1849_v3  ;;  %1711 = vmatprep.subr.msk.bf16.mxu0 %vm1710_vm11, %v1851_v26  ;;  %vm1718_vm15 = vmpackc.low %vm160_vm7, %vm152_vm6 }
  0x18   :  { %1615 = vmatmul.mubr.msk.f32.gmra.mrb[2].mxu0 %vm249_vm12, %v2040_v39  ;;  %1719 = vmatprep.subr.msk.bf16.mxu1 %vm1718_vm15, %v1851_v26  ;;  %vm1712_vm0 = vmpackc.low %vm157_vm10, %vm149_vm9 }
  0x19   :  { %1631 = vmatmul.mubr.msk.f32.gmra.mrb[2].mxu1 %vm249_vm12, %v2040_v39  ;;  %350 = vmatprep.mubr.f32.mxu0 %v1849_v3  ;;  %vm1720_vm1 = vmpackc.low %vm159_vm14, %vm151_vm13 }
  0x1a   :  { %463 = vmatprep.mubr.f32.mxu1 %v1849_v3  ;;  %1713 = vmatpush1.bf16.msk.msra.mxu0 %vm1712_vm0, %v1851_v26 }
  0x1b   :  { %1721 = vmatpush1.bf16.msk.msra.mxu1 %vm1720_vm1, %v1851_v26  ;;  %800 = vperm.xlu0 %1823, %v794_v40  }
  0x1c   :  { %1616 = vmatmul.mubr.msk.f32.gmra.mrb[4].mxu0 %vm249_vm12, %v195_v41  ;;  %805 = vperm.xlu1 %1824, %v795_v48  }
  0x1d   :  { %1632 = vmatmul.mubr.msk.f32.gmra.mrb[4].mxu1 %vm249_vm12, %v195_v41  ;;  %356 = vmatprep.mubr.f32.mxu0 %v1849_v3 }
  0x1e   :  { %469 = vmatprep.mubr.f32.mxu1 %v1849_v3 }
  0x1f   :  { %810 = vperm.xlu0 %1823, %v796_v43  }
  0x20   :  { %1617 = vmatmul.mubr.msk.f32.gmra.mrb[6].mxu0 %vm249_vm12, %v196_v44  ;;  %815 = vperm.xlu1 %1824, %v797_v50  }
  0x21   :  { %1633 = vmatmul.mubr.msk.f32.gmra.mrb[6].mxu1 %vm249_vm12, %v196_v44  ;;  %362 = vmatprep.mubr.f32.mxu0 %v1849_v3 }
  0x22   :  { %475 = vmatprep.mubr.f32.mxu1 %v1849_v3 }
  0x23   :  { %1223 = vperm.xlu0 %1823, %v1220_v46  }
  0x24   :  { %1618 = vmatmul.mubr.msk.f32.gmra.mrb[8].mxu0 %vm249_vm12, %v197_v47 }
  0x25   :  { %1634 = vmatmul.mubr.msk.f32.gmra.mrb[8].mxu1 %vm249_vm12, %v197_v47  ;;  %368 = vmatprep.mubr.f32.mxu0 %v1849_v3 }
  0x26   :  { %481 = vmatprep.mubr.f32.mxu1 %v1849_v3 }
  0x28   :  { %1619 = vmatmul.mubr.msk.f32.gmra.mrb[10].mxu0 %vm249_vm12, %v198_v49 }
  0x29   :  { %1635 = vmatmul.mubr.msk.f32.gmra.mrb[10].mxu1 %vm249_vm12, %v198_v49  ;;  %374 = vmatprep.mubr.f32.mxu0 %v1849_v3 }
  0x2a   :  { %487 = vmatprep.mubr.f32.mxu1 %v1849_v3 }
  0x2c   :  { %1620 = vmatmul.mubr.msk.f32.gmra.mrb[12].mxu0 %vm249_vm12, %v199_v51 }
  0x2d   :  { %1636 = vmatmul.mubr.msk.f32.gmra.mrb[12].mxu1 %vm249_vm12, %v199_v51  ;;  %380 = vmatprep.mubr.f32.mxu0 %v1849_v3 }
  0x2e   :  { %493 = vmatprep.mubr.f32.mxu1 %v1849_v3 }
  0x30   :  { %1621 = vmatmul.mubr.msk.f32.gmra.mrb[14].mxu0 %vm249_vm12, %v200_v52 }
  0x31   :  { %1637 = vmatmul.mubr.msk.f32.gmra.mrb[14].mxu1 %vm249_vm12, %v200_v52  ;;  %564 = vmatprep.mubr.f32.mxu0 %v1849_v3 }
  0x32   :  { %677 = vmatprep.mubr.f32.mxu1 %v1849_v3 }
  0x34   :  { %1646 = vmatmul.mubr.msk.f32.vlgmr.msra.gmra.mrb[16].mxu0 %vm249_vm12, %v2003_v36 }
  0x35   :  { %1662 = vmatmul.mubr.msk.f32.vlgmr.msra.gmra.mrb[16].mxu1 %vm249_vm12, %v2003_v36  ;;  %570 = vmatprep.mubr.f32.mxu0 %v1849_v3 }
  0x36   :  { %683 = vmatprep.mubr.f32.mxu1 %v1849_v3 }
  0x38   :  { %1647 = vmatmul.mubr.msk.f32.gmra.mrb[18].mxu0 %vm249_vm12, %v2040_v39 }
  0x39   :  { %1663 = vmatmul.mubr.msk.f32.gmra.mrb[18].mxu1 %vm249_vm12, %v2040_v39  ;;  %576 = vmatprep.mubr.f32.mxu0 %v1849_v3 }
  0x3a   :  { %689 = vmatprep.mubr.f32.mxu1 %v1849_v3 }
  0x3c   :  { %1648 = vmatmul.mubr.msk.f32.gmra.mrb[20].mxu0 %vm249_vm12, %v195_v41 }
  0x3d   :  { %1664 = vmatmul.mubr.msk.f32.gmra.mrb[20].mxu1 %vm249_vm12, %v195_v41  ;;  %582 = vmatprep.mubr.f32.mxu0 %v1849_v3 }
  0x3e   :  { %695 = vmatprep.mubr.f32.mxu1 %v1849_v3 }
  0x40   :  { %1649 = vmatmul.mubr.msk.f32.gmra.mrb[22].mxu0 %vm249_vm12, %v196_v44 }
  0x41   :  { %1665 = vmatmul.mubr.msk.f32.gmra.mrb[22].mxu1 %vm249_vm12, %v196_v44  ;;  %588 = vmatprep.mubr.f32.mxu0 %v1849_v3 }
  0x42   :  { %701 = vmatprep.mubr.f32.mxu1 %v1849_v3 }
  0x44   :  { %1650 = vmatmul.mubr.msk.f32.gmra.mrb[24].mxu0 %vm249_vm12, %v197_v47 }
  0x45   :  { %1666 = vmatmul.mubr.msk.f32.gmra.mrb[24].mxu1 %vm249_vm12, %v197_v47  ;;  %594 = vmatprep.mubr.f32.mxu0 %v1849_v3 }
  0x46   :  { %707 = vmatprep.mubr.f32.mxu1 %v1849_v3 }
  0x48   :  { %1651 = vmatmul.mubr.msk.f32.gmra.mrb[26].mxu0 %vm249_vm12, %v198_v49 }
  0x49   :  { %1667 = vmatmul.mubr.msk.f32.gmra.mrb[26].mxu1 %vm249_vm12, %v198_v49  ;;  %600 = vmatprep.mubr.f32.mxu0 %v1849_v3 }
  0x4a   :  { %713 = vmatprep.mubr.f32.mxu1 %v1849_v3 }
  0x4c   :  { %1652 = vmatmul.mubr.msk.f32.gmra.mrb[28].mxu0 %vm249_vm12, %v199_v51 }
  0x4d   :  { %1668 = vmatmul.mubr.msk.f32.gmra.mrb[28].mxu1 %vm249_vm12, %v199_v51  ;;  %606 = vmatprep.mubr.f32.mxu0 %v1849_v3 }
  0x4e   :  { %719 = vmatprep.mubr.f32.mxu1 %v1849_v3 }
  0x50   :  { %1653 = vmatmul.mubr.msk.f32.gmra.mrb[30].mxu0 %vm249_vm12, %v200_v52 }
  0x51   :  { %1669 = vmatmul.mubr.msk.f32.gmra.mrb[30].mxu1 %vm249_vm12, %v200_v52  ;;  %895 = vmatprep.mubr.f32.mxu0 %v1849_v3 }
  0x52   :  { %984 = vmatprep.mubr.f32.mxu1 %v1849_v3 }
  0x82   :  { %v2164_v53 = vpop.permute.xlu0 %211  ;;  %v2170_v61 = vpop.permute.xlu1 %221 }
  0x86   :  { %v2166_v57 = vpop.permute.xlu0 %216 }
  0x89   :  { %v2178_v23 = vpop.permute.xlu1 %226 }
  0x8b   :  { %v2188_v41 = vpop.permute.xlu0 %231 }
  0x8e   :  { %v2190_v52 = vpop.permute.xlu1 %236 }
  0xe7   :  { %v340_v54 = vpop.f32.mrb[0].mxu0 }
  0xe8   :  { %v453_v55 = vpop.f32.mrb[0].mxu1  ;;  %v342_v56 = vpop.f32.mrb[1].mxu0  ;;  %v341_v59 = vadd.f32 %v340_v54, %v2164_v53 }
  0xe9   :  { %v455_v58 = vpop.f32.mrb[1].mxu1  ;;  %v454_v60 = vadd.f32 %v453_v55, %v2164_v53  ;;  %v343_v62 = vadd.f32 %v342_v56, %v2164_v53 }
  0xea   :  { %v456_v0 = vadd.f32 %v455_v58, %v2164_v53  ;;  %v726_v9 = vmax.f32 %v341_v59, 0.0 }
  0xeb   :  { %v346_v63 = vpop.f32.mrb[2].mxu0  ;;  %v728_v12 = vmax.f32 %v454_v60, 0.0  ;;  %v727_v13 = vmax.f32 %v343_v62, 0.0 }
  0xec   :  { %v347_v2 = vadd.f32 %v346_v63, %v2166_v57  ;;  %v459_v4 = vpop.f32.mrb[2].mxu1  ;;  %v348_v5 = vpop.f32.mrb[3].mxu0  ;;  %v729_v17 = vmax.f32 %v456_v0, 0.0 }
  0xed   :  { %v460_v6 = vadd.f32 %v459_v4, %v2166_v57  ;;  %v349_v7 = vadd.f32 %v348_v5, %v2166_v57  ;;  %v461_v8 = vpop.f32.mrb[3].mxu1 }
  0xee   :  { %v734_v10 = vmax.f32 %v347_v2, 0.0  ;;  %v462_v11 = vadd.f32 %v461_v8, %v2166_v57 }
  0xef   :  { %v736_v14 = vmax.f32 %v460_v6, 0.0  ;;  %v735_v15 = vmax.f32 %v349_v7, 0.0  ;;  %v352_v16 = vpop.f32.mrb[4].mxu0 }
  0xf0   :  { %v1724_v18 = vpack.c.bf16 %v734_v10, %v726_v9  ;;  %v737_v19 = vmax.f32 %v462_v11, 0.0  ;;  %v465_v20 = vpop.f32.mrb[4].mxu1  ;;  %v354_v21 = vpop.f32.mrb[5].mxu0  ;;  %v353_v27 = vadd.f32 %v352_v16, %v2170_v61 }
  0xf1   :  { %v1740_v22 = vpack.c.bf16 %v736_v14, %v728_v12  ;;  %v1722_v24 = vpack.c.bf16 %v735_v15, %v727_v13  ;;  %v467_v25 = vpop.f32.mrb[5].mxu1  ;;  %v466_v28 = vadd.f32 %v465_v20, %v2170_v61  ;;  %v355_v29 = vadd.f32 %v354_v21, %v2170_v61 }
  0xf2   :  { %v1738_v26 = vpack.c.bf16 %v737_v19, %v729_v17  ;;  %v468_v31 = vadd.f32 %v467_v25, %v2170_v61  ;;  %v742_v38 = vmax.f32 %v353_v27, 0.0 }
  0xf3   :  { %v358_v30 = vpop.f32.mrb[6].mxu0  ;;  %1723 = vmatprep.subr.bf16.mxu0 %v1722_v24  ;;  %v744_v42 = vmax.f32 %v466_v28, 0.0  ;;  %v743_v43 = vmax.f32 %v355_v29, 0.0  ;;  %v2203_v29 = vpop.permute.xlu1 %246 }
  0xf4   :  { %v359_v32 = vadd.f32 %v358_v30, %v2178_v23  ;;  %v471_v33 = vpop.f32.mrb[6].mxu1  ;;  %1739 = vmatprep.subr.bf16.mxu1 %v1738_v26  ;;  %v360_v34 = vpop.f32.mrb[7].mxu0  ;;  %1725 = vmatpush1.bf16.msra.mxu0 %v1724_v18  ;;  %v745_v47 = vmax.f32 %v468_v31, 0.0 }
  0xf5   :  { %v472_v35 = vadd.f32 %v471_v33, %v2178_v23  ;;  %v361_v36 = vadd.f32 %v360_v34, %v2178_v23  ;;  %v473_v37 = vpop.f32.mrb[7].mxu1  ;;  %1741 = vmatpush1.bf16.msra.mxu1 %v1740_v22  ;;  %v2200_v22 = vpop.permute.xlu0 %241 }
  0xf6   :  { %v750_v39 = vmax.f32 %v359_v32, 0.0  ;;  %v474_v40 = vadd.f32 %v473_v37, %v2178_v23 }
  0xf7   :  { %v752_v44 = vmax.f32 %v472_v35, 0.0  ;;  %v751_v45 = vmax.f32 %v361_v36, 0.0  ;;  %v364_v46 = vpop.f32.mrb[8].mxu0 }
  0xf8   :  { %v1728_v48 = vpack.c.bf16 %v750_v39, %v742_v38  ;;  %v753_v49 = vmax.f32 %v474_v40, 0.0  ;;  %v477_v50 = vpop.f32.mrb[8].mxu1  ;;  %v366_v51 = vpop.f32.mrb[9].mxu0  ;;  %v365_v59 = vadd.f32 %v364_v46, %v2188_v41 }
  0xf9   :  { %v1744_v54 = vpack.c.bf16 %v752_v44, %v744_v42  ;;  %v1726_v55 = vpack.c.bf16 %v751_v45, %v743_v43  ;;  %v479_v56 = vpop.f32.mrb[9].mxu1  ;;  %v478_v60 = vadd.f32 %v477_v50, %v2188_v41  ;;  %v367_v62 = vadd.f32 %v366_v51, %v2188_v41 }
  0xfa   :  { %v1742_v58 = vpack.c.bf16 %v753_v49, %v745_v47  ;;  %v480_v0 = vadd.f32 %v479_v56, %v2188_v41  ;;  %v758_v9 = vmax.f32 %v365_v59, 0.0 }
  0xfb   :  { %v370_v63 = vpop.f32.mrb[10].mxu0  ;;  %1727 = vmatprep.subr.bf16.mxu0 %v1726_v55  ;;  %v760_v12 = vmax.f32 %v478_v60, 0.0  ;;  %v759_v13 = vmax.f32 %v367_v62, 0.0 }
  0xfc   :  { %v371_v2 = vadd.f32 %v370_v63, %v2190_v52  ;;  %v483_v4 = vpop.f32.mrb[10].mxu1  ;;  %1743 = vmatprep.subr.bf16.mxu1 %v1742_v58  ;;  %v372_v5 = vpop.f32.mrb[11].mxu0  ;;  %1729 = vmatpush1.bf16.msra.mxu0 %v1728_v48  ;;  %v761_v17 = vmax.f32 %v480_v0, 0.0 }
  0xfd   :  { %v484_v6 = vadd.f32 %v483_v4, %v2190_v52  ;;  %v373_v7 = vadd.f32 %v372_v5, %v2190_v52  ;;  %v485_v8 = vpop.f32.mrb[11].mxu1  ;;  %1745 = vmatpush1.bf16.msra.mxu1 %v1744_v54 }
  0xfe   :  { %v766_v10 = vmax.f32 %v371_v2, 0.0  ;;  %v486_v11 = vadd.f32 %v485_v8, %v2190_v52  ;;  %v2220_v8 = vld [vmem:[%s2383_s3] sm:$0xff] }
  0xff   :  { %v768_v14 = vmax.f32 %v484_v6, 0.0  ;;  %v767_v15 = vmax.f32 %v373_v7, 0.0  ;;  %v376_v16 = vpop.f32.mrb[12].mxu0 }
 0x100   :  { %v1732_v18 = vpack.c.bf16 %v766_v10, %v758_v9  ;;  %v769_v19 = vmax.f32 %v486_v11, 0.0  ;;  %v489_v20 = vpop.f32.mrb[12].mxu1  ;;  %v378_v21 = vpop.f32.mrb[13].mxu0  ;;  %v377_v28 = vadd.f32 %v376_v16, %v2200_v22 }
 0x101   :  { %v1748_v24 = vpack.c.bf16 %v768_v14, %v760_v12  ;;  %v1730_v25 = vpack.c.bf16 %v767_v15, %v759_v13  ;;  %v491_v26 = vpop.f32.mrb[13].mxu1  ;;  %v490_v30 = vadd.f32 %v489_v20, %v2200_v22  ;;  %v379_v31 = vadd.f32 %v378_v21, %v2200_v22 }
 0x102   :  { %v1746_v27 = vpack.c.bf16 %v769_v19, %v761_v17  ;;  %v492_v33 = vadd.f32 %v491_v26, %v2200_v22  ;;  %v774_v40 = vmax.f32 %v377_v28, 0.0 }
 0x103   :  { %v382_v32 = vpop.f32.mrb[14].mxu0  ;;  %1731 = vmatprep.subr.bf16.mxu0 %v1730_v25  ;;  %v776_v44 = vmax.f32 %v490_v30, 0.0  ;;  %v775_v45 = vmax.f32 %v379_v31, 0.0 }
 0x104   :  { %v383_v34 = vadd.f32 %v382_v32, %v2203_v29  ;;  %v495_v35 = vpop.f32.mrb[14].mxu1  ;;  %1747 = vmatprep.subr.bf16.mxu1 %v1746_v27  ;;  %v384_v36 = vpop.f32.mrb[15].mxu0  ;;  %1733 = vmatpush1.bf16.msra.mxu0 %v1732_v18  ;;  %v777_v49 = vmax.f32 %v492_v33, 0.0 }
 0x105   :  { %v496_v37 = vadd.f32 %v495_v35, %v2203_v29  ;;  %v385_v38 = vadd.f32 %v384_v36, %v2203_v29  ;;  %v497_v39 = vpop.f32.mrb[15].mxu1  ;;  %1749 = vmatpush1.bf16.msra.mxu1 %v1748_v24 }
 0x106   :  { %v782_v42 = vmax.f32 %v383_v34, 0.0  ;;  %v498_v43 = vadd.f32 %v497_v39, %v2203_v29  ;;  %v2248_v39 = vld [vmem:[%s2383_s3 + $0x10] sm:$0xff] }
 0x107   :  { %v784_v46 = vmax.f32 %v496_v37, 0.0  ;;  %v783_v47 = vmax.f32 %v385_v38, 0.0  ;;  %v566_v48 = vpop.f32.mrb[16].mxu0 }
 0x108   :  { %v1736_v50 = vpack.c.bf16 %v782_v42, %v774_v40  ;;  %v785_v51 = vmax.f32 %v498_v43, 0.0  ;;  %v679_v54 = vpop.f32.mrb[16].mxu1  ;;  %v568_v55 = vpop.f32.mrb[17].mxu0  ;;  %v567_v62 = vadd.f32 %v566_v48, %v2164_v53 }
 0x109   :  { %v1752_v56 = vpack.c.bf16 %v784_v46, %v776_v44  ;;  %v1734_v58 = vpack.c.bf16 %v783_v47, %v775_v45  ;;  %v681_v59 = vpop.f32.mrb[17].mxu1  ;;  %v680_v63 = vadd.f32 %v679_v54, %v2164_v53  ;;  %v569_v0 = vadd.f32 %v568_v55, %v2164_v53 }
 0x10a   :  { %v1750_v60 = vpack.c.bf16 %v785_v51, %v777_v49  ;;  %v682_v4 = vadd.f32 %v681_v59, %v2164_v53  ;;  %v730_v12 = vmax.f32 %v567_v62, 0.0 }
 0x10b   :  { %v572_v2 = vpop.f32.mrb[18].mxu0  ;;  %1735 = vmatprep.subr.bf16.mxu0 %v1734_v58  ;;  %v732_v14 = vmax.f32 %v680_v63, 0.0  ;;  %v731_v15 = vmax.f32 %v569_v0, 0.0  ;;  %v2263_v58 = vld [vmem:[%s2383_s3 + $0x18] sm:$0xff] }
 0x10c   :  { %v573_v5 = vadd.f32 %v572_v2, %v2166_v57  ;;  %v685_v6 = vpop.f32.mrb[18].mxu1  ;;  %1751 = vmatprep.subr.bf16.mxu1 %v1750_v60  ;;  %v574_v7 = vpop.f32.mrb[19].mxu0  ;;  %1737 = vmatpush1.bf16.msra.mxu0 %v1736_v50  ;;  %v733_v19 = vmax.f32 %v682_v4, 0.0 }
 0x10d   :  { %v686_v9 = vadd.f32 %v685_v6, %v2166_v57  ;;  %v575_v10 = vadd.f32 %v574_v7, %v2166_v57  ;;  %v687_v11 = vpop.f32.mrb[19].mxu1  ;;  %1753 = vmatpush1.bf16.msra.mxu1 %v1752_v56 }
 0x10e   :  { %v738_v53 = vmax.f32 %v573_v5, 0.0  ;;  %v688_v13 = vadd.f32 %v687_v11, %v2166_v57  ;;  %v2233_v57 = vld [vmem:[%s2383_s3 + $0x8] sm:$0xff] }
 0x10f   :  { %v740_v16 = vmax.f32 %v686_v9, 0.0  ;;  %v739_v17 = vmax.f32 %v575_v10, 0.0  ;;  %v578_v18 = vpop.f32.mrb[20].mxu0  ;;  %1670 = vmatmul.mubr.msk.f32.vlgmr.msra.gmra.mrb[32].mxu0 %vm818_vm2, %v2220_v8 }
 0x110   :  { %v1756_v20 = vpack.c.bf16 %v738_v53, %v730_v12  ;;  %v741_v21 = vmax.f32 %v688_v13, 0.0  ;;  %v691_v24 = vpop.f32.mrb[20].mxu1  ;;  %1674 = vmatmul.mubr.msk.f32.vlgmr.msra.gmra.mrb[32].mxu1 %vm818_vm2, %v2220_v8  ;;  %v580_v25 = vpop.f32.mrb[21].mxu0  ;;  %901 = vmatprep.mubr.f32.mxu0 %v1849_v3  ;;  %v579_v31 = vadd.f32 %v578_v18, %v2170_v61 }
 0x111   :  { %v1772_v26 = vpack.c.bf16 %v740_v16, %v732_v14  ;;  %v1754_v27 = vpack.c.bf16 %v739_v17, %v731_v15  ;;  %v693_v28 = vpop.f32.mrb[21].mxu1  ;;  %990 = vmatprep.mubr.f32.mxu1 %v1849_v3  ;;  %v692_v32 = vadd.f32 %v691_v24, %v2170_v61  ;;  %v581_v33 = vadd.f32 %v580_v25, %v2170_v61 }
 0x112   :  { %v1770_v30 = vpack.c.bf16 %v741_v21, %v733_v19  ;;  %v694_v35 = vadd.f32 %v693_v28, %v2170_v61  ;;  %v746_v61 = vmax.f32 %v579_v31, 0.0 }
 0x113   :  { %v584_v34 = vpop.f32.mrb[22].mxu0  ;;  %1671 = vmatmul.mubr.msk.f32.gmra.mrb[34].mxu0 %vm818_vm2, %v2233_v57  ;;  %1755 = vmatprep.subr.bf16.mxu0 %v1754_v27  ;;  %v748_v46 = vmax.f32 %v692_v32, 0.0  ;;  %v747_v47 = vmax.f32 %v581_v33, 0.0 }
 0x114   :  { %v585_v36 = vadd.f32 %v584_v34, %v2178_v23  ;;  %v697_v37 = vpop.f32.mrb[22].mxu1  ;;  %1675 = vmatmul.mubr.msk.f32.gmra.mrb[34].mxu1 %vm818_vm2, %v2233_v57  ;;  %1771 = vmatprep.subr.bf16.mxu1 %v1770_v30  ;;  %v586_v38 = vpop.f32.mrb[23].mxu0  ;;  %v749_v51 = vmax.f32 %v694_v35, 0.0 }
 0x115   :  { %v698_v40 = vadd.f32 %v697_v37, %v2178_v23  ;;  %v587_v42 = vadd.f32 %v586_v38, %v2178_v23  ;;  %v699_v43 = vpop.f32.mrb[23].mxu1  ;;  %1757 = vmatpush1.bf16.msra.mxu0 %v1756_v20  ;;  %1773 = vmatpush1.bf16.msra.mxu1 %v1772_v26 }
 0x116   :  { %v754_v44 = vmax.f32 %v585_v36, 0.0  ;;  %v700_v45 = vadd.f32 %v699_v43, %v2178_v23  ;;  %907 = vmatprep.mubr.f32.mxu0 %v1849_v3  ;;  %996 = vmatprep.mubr.f32.mxu1 %v1849_v3 }
 0x117   :  { %v756_v48 = vmax.f32 %v698_v40, 0.0  ;;  %v755_v49 = vmax.f32 %v587_v42, 0.0  ;;  %v590_v50 = vpop.f32.mrb[24].mxu0  ;;  %1672 = vmatmul.mubr.msk.f32.gmra.mrb[36].mxu0 %vm818_vm2, %v2248_v39 }
 0x118   :  { %v1760_v54 = vpack.c.bf16 %v754_v44, %v746_v61  ;;  %v757_v55 = vmax.f32 %v700_v45, 0.0  ;;  %v703_v56 = vpop.f32.mrb[24].mxu1  ;;  %1676 = vmatmul.mubr.msk.f32.gmra.mrb[36].mxu1 %vm818_vm2, %v2248_v39  ;;  %v592_v23 = vpop.f32.mrb[25].mxu0  ;;  %913 = vmatprep.mubr.f32.mxu0 %v1849_v3  ;;  %v591_v0 = vadd.f32 %v590_v50, %v2188_v41 }
 0x119   :  { %v1776_v59 = vpack.c.bf16 %v756_v48, %v748_v46  ;;  %v1758_v60 = vpack.c.bf16 %v755_v49, %v747_v47  ;;  %v705_v62 = vpop.f32.mrb[25].mxu1  ;;  %1002 = vmatprep.mubr.f32.mxu1 %v1849_v3  ;;  %v704_v2 = vadd.f32 %v703_v56, %v2188_v41  ;;  %v593_v4 = vadd.f32 %v592_v23, %v2188_v41  ;;  %v2312_v23 = vpop.permute.xlu0 %800 }
 0x11a   :  { %v1774_v63 = vpack.c.bf16 %v757_v55, %v749_v51  ;;  %v706_v6 = vadd.f32 %v705_v62, %v2188_v41  ;;  %v762_v13 = vmax.f32 %v591_v0, 0.0 }
 0x11b   :  { %v596_v5 = vpop.f32.mrb[26].mxu0  ;;  %1673 = vmatmul.mubr.msk.f32.gmra.mrb[38].mxu0 %vm818_vm2, %v2263_v58  ;;  %1759 = vmatprep.subr.bf16.mxu0 %v1758_v60  ;;  %v764_v41 = vmax.f32 %v704_v2, 0.0  ;;  %v763_v16 = vmax.f32 %v593_v4, 0.0  ;;  %v2315_v60 = vpop.permute.xlu1 %805 }
 0x11c   :  { %v597_v7 = vadd.f32 %v596_v5, %v2190_v52  ;;  %v709_v9 = vpop.f32.mrb[26].mxu1  ;;  %1677 = vmatmul.mubr.msk.f32.gmra.mrb[38].mxu1 %vm818_vm2, %v2263_v58  ;;  %1775 = vmatprep.subr.bf16.mxu1 %v1774_v63  ;;  %v598_v10 = vpop.f32.mrb[27].mxu0  ;;  %v765_v20 = vmax.f32 %v706_v6, 0.0 }
 0x11d   :  { %v710_v11 = vadd.f32 %v709_v9, %v2190_v52  ;;  %v599_v12 = vadd.f32 %v598_v10, %v2190_v52  ;;  %v711_v53 = vpop.f32.mrb[27].mxu1  ;;  %1761 = vmatpush1.bf16.msra.mxu0 %v1760_v54  ;;  %1777 = vmatpush1.bf16.msra.mxu1 %v1776_v59 }
 0x11e   :  { %v770_v14 = vmax.f32 %v597_v7, 0.0  ;;  %v712_v15 = vadd.f32 %v711_v53, %v2190_v52  ;;  %1073 = vmatprep.mubr.f32.mxu0 %v1849_v3  ;;  %1162 = vmatprep.mubr.f32.mxu1 %v1849_v3 }
 0x11f   :  { %v772_v17 = vmax.f32 %v710_v11, 0.0  ;;  %v771_v18 = vmax.f32 %v599_v12, 0.0  ;;  %v602_v19 = vpop.f32.mrb[28].mxu0 }
 0x120   :  { %v1764_v21 = vpack.c.bf16 %v770_v14, %v762_v13  ;;  %v773_v24 = vmax.f32 %v712_v15, 0.0  ;;  %v715_v25 = vpop.f32.mrb[28].mxu1  ;;  %v604_v26 = vpop.f32.mrb[29].mxu0  ;;  %v603_v52 = vadd.f32 %v602_v19, %v2200_v22 }
 0x121   :  { %v1780_v27 = vpack.c.bf16 %v772_v17, %v764_v41  ;;  %v1762_v28 = vpack.c.bf16 %v771_v18, %v763_v16  ;;  %v717_v30 = vpop.f32.mrb[29].mxu1  ;;  %v716_v32 = vadd.f32 %v715_v25, %v2200_v22  ;;  %v605_v33 = vadd.f32 %v604_v26, %v2200_v22 }
 0x122   :  { %v1778_v31 = vpack.c.bf16 %v773_v24, %v765_v20  ;;  %v718_v35 = vadd.f32 %v717_v30, %v2200_v22  ;;  %v778_v61 = vmax.f32 %v603_v52, 0.0  ;;  %v2327_v30 = vpop.permute.xlu1 %815 }
 0x123   :  { %v608_v34 = vpop.f32.mrb[30].mxu0  ;;  %1763 = vmatprep.subr.bf16.mxu0 %v1762_v28  ;;  %v780_v46 = vmax.f32 %v716_v32, 0.0  ;;  %v779_v47 = vmax.f32 %v605_v33, 0.0 }
 0x124   :  { %v609_v36 = vadd.f32 %v608_v34, %v2203_v29  ;;  %v721_v37 = vpop.f32.mrb[30].mxu1  ;;  %1779 = vmatprep.subr.bf16.mxu1 %v1778_v31  ;;  %v610_v38 = vpop.f32.mrb[31].mxu0  ;;  %1765 = vmatpush1.bf16.msra.mxu0 %v1764_v21  ;;  %v781_v49 = vmax.f32 %v718_v35, 0.0 }
 0x125   :  { %v722_v40 = vadd.f32 %v721_v37, %v2203_v29  ;;  %v611_v42 = vadd.f32 %v610_v38, %v2203_v29  ;;  %v723_v43 = vpop.f32.mrb[31].mxu1  ;;  %1781 = vmatpush1.bf16.msra.mxu1 %v1780_v27  ;;  %v2324_v21 = vpop.permute.xlu0 %810 }
 0x126   :  { %v786_v44 = vmax.f32 %v609_v36, 0.0  ;;  %v724_v45 = vadd.f32 %v723_v43, %v2203_v29 }
 0x127   :  { %v788_v48 = vmax.f32 %v722_v40, 0.0  ;;  %v787_v22 = vmax.f32 %v611_v42, 0.0 }
 0x128   :  { %v1768_v50 = vpack.c.bf16 %v786_v44, %v778_v61  ;;  %v789_v51 = vmax.f32 %v724_v45, 0.0 }
 0x129   :  { %v1784_v54 = vpack.c.bf16 %v788_v48, %v780_v46  ;;  %v1766_v55 = vpack.c.bf16 %v787_v22, %v779_v47 }
 0x12a   :  { %v1782_v56 = vpack.c.bf16 %v789_v51, %v781_v49 }
 0x12b   :  { %1767 = vmatprep.subr.bf16.mxu0 %v1766_v55  ;;  %v2339_v55 = vld [vmem:[%s2385_s5] sm:$0x3]  ;;  %s1853_s5 = smov [#allocation2]  }
 0x12c   :  { %1783 = vmatprep.subr.bf16.mxu1 %v1782_v56  ;;  %1769 = vmatpush1.bf16.msra.mxu0 %v1768_v50  ;;  %s1565_s27 = sshll.u32 %s1853_s5, 4  ;;  %s1566_s27 = int_to_ptr.vmem [resolvable:$true] %s1565_s27 }
 0x12d   :  { %1785 = vmatpush1.bf16.msra.mxu1 %v1784_v54  ;;  %s1825_s28 = scalar_lea.vmem %s1566_s27, 256  ;;  %p1830_p1 = scmp.lt.s32.totalorder %s1566_s27, %s1566_s27 }
 0x12e   :  { %p1826_p0 = scmp.ne.s32.totalorder %s1566_s27, %s1825_s28  ;;  %p1831_p2 = scmp.lt.s32.totalorder %s1825_s28, %s1825_s28 }
 0x12f   :  { %1678 = vmatmul.mubr.msk.f32.vlgmr.msra.gmra.mrb[40].mxu0 %vm818_vm2, %v2220_v8 }
 0x130   :  { %1682 = vmatmul.mubr.msk.f32.vlgmr.msra.gmra.mrb[40].mxu1 %vm818_vm2, %v2220_v8  ;;  %1079 = vmatprep.mubr.f32.mxu0 %v1849_v3  ;;  %p1832_p3 = por %p1831_p2, %p1830_p1 }
 0x131   :  { %1168 = vmatprep.mubr.f32.mxu1 %v1849_v3 }
 0x132   :  { %p1833_p4 = pnand %p1832_p3, %p1826_p0 }
 0x133   :  { %1679 = vmatmul.mubr.msk.f32.gmra.mrb[42].mxu0 %vm818_vm2, %v2233_v57 }
 0x134   :  { %1683 = vmatmul.mubr.msk.f32.gmra.mrb[42].mxu1 %vm818_vm2, %v2233_v57  ;;  %1085 = vmatprep.mubr.f32.mxu0 %v1849_v3 }
 0x135   :  { %1174 = vmatprep.mubr.f32.mxu1 %v1849_v3 }
 0x137   :  { %1680 = vmatmul.mubr.msk.f32.gmra.mrb[44].mxu0 %vm818_vm2, %v2248_v39 }
 0x138   :  { %1684 = vmatmul.mubr.msk.f32.gmra.mrb[44].mxu1 %vm818_vm2, %v2248_v39  ;;  %1091 = vmatprep.mubr.f32.mxu0 %v1849_v3 }
 0x139   :  { %1180 = vmatprep.mubr.f32.mxu1 %v1849_v3 }
 0x13b   :  { %1681 = vmatmul.mubr.msk.f32.gmra.mrb[46].mxu0 %vm818_vm2, %v2263_v58 }
 0x13c   :  { %1685 = vmatmul.mubr.msk.f32.gmra.mrb[46].mxu1 %vm818_vm2, %v2263_v58  ;;  %1293 = vmatprep.mubr.f32.mxu0 %v1849_v3 }
 0x13d   :  { %1364 = vmatprep.mubr.f32.mxu1 %v1849_v3 }
 0x1e2   :  { %v897_v29 = vpop.f32.mrb[32].mxu0 }
 0x1e3   :  { %v986_v8 = vpop.f32.mrb[32].mxu1  ;;  %v899_v57 = vpop.f32.mrb[33].mxu0  ;;  %v898_v59 = vadd.f32 %v897_v29, %v2312_v23 }
 0x1e4   :  { %v988_v39 = vpop.f32.mrb[33].mxu1  ;;  %v987_v62 = vadd.f32 %v986_v8, %v2312_v23  ;;  %v900_v63 = vadd.f32 %v899_v57, %v2312_v23 }
 0x1e5   :  { %v989_v58 = vadd.f32 %v988_v39, %v2312_v23  ;;  %v1187_v10 = vmax.f32 %v898_v59, 0.0 }
 0x1e6   :  { %v903_v0 = vpop.f32.mrb[34].mxu0  ;;  %v1189_v53 = vmax.f32 %v987_v62, 0.0  ;;  %v1188_v13 = vmax.f32 %v900_v63, 0.0 }
 0x1e7   :  { %v904_v2 = vadd.f32 %v903_v0, %v2315_v60  ;;  %v992_v4 = vpop.f32.mrb[34].mxu1  ;;  %v905_v5 = vpop.f32.mrb[35].mxu0  ;;  %v1190_v16 = vmax.f32 %v989_v58, 0.0 }
 0x1e8   :  { %v993_v6 = vadd.f32 %v992_v4, %v2315_v60  ;;  %v906_v7 = vadd.f32 %v905_v5, %v2315_v60  ;;  %v994_v9 = vpop.f32.mrb[35].mxu1 }
 0x1e9   :  { %v1195_v11 = vmax.f32 %v904_v2, 0.0  ;;  %v995_v12 = vadd.f32 %v994_v9, %v2315_v60 }
 0x1ea   :  { %v1197_v14 = vmax.f32 %v993_v6, 0.0  ;;  %v1196_v15 = vmax.f32 %v906_v7, 0.0  ;;  %v909_v41 = vpop.f32.mrb[36].mxu0 }
 0x1eb   :  { %v1788_v17 = vpack.c.bf16 %v1195_v11, %v1187_v10  ;;  %v1198_v18 = vmax.f32 %v995_v12, 0.0  ;;  %v998_v19 = vpop.f32.mrb[36].mxu1  ;;  %v911_v20 = vpop.f32.mrb[37].mxu0  ;;  %v910_v28 = vadd.f32 %v909_v41, %v2324_v21 }
 0x1ec   :  { %v1796_v24 = vpack.c.bf16 %v1197_v14, %v1189_v53  ;;  %v1786_v25 = vpack.c.bf16 %v1196_v15, %v1188_v13  ;;  %v1000_v26 = vpop.f32.mrb[37].mxu1  ;;  %v999_v31 = vadd.f32 %v998_v19, %v2324_v21  ;;  %v912_v52 = vadd.f32 %v911_v20, %v2324_v21 }
 0x1ed   :  { %v1794_v27 = vpack.c.bf16 %v1198_v18, %v1190_v16  ;;  %v1001_v33 = vadd.f32 %v1000_v26, %v2324_v21  ;;  %v1203_v42 = vmax.f32 %v910_v28, 0.0 }
 0x1ee   :  { %v915_v32 = vpop.f32.mrb[38].mxu0  ;;  %1787 = vmatprep.subr.bf16.mxu0 %v1786_v25  ;;  %v1205_v44 = vmax.f32 %v999_v31, 0.0  ;;  %v1204_v45 = vmax.f32 %v912_v52, 0.0 }
 0x1ef   :  { %v916_v34 = vadd.f32 %v915_v32, %v2327_v30  ;;  %v1004_v35 = vpop.f32.mrb[38].mxu1  ;;  %1795 = vmatprep.subr.bf16.mxu1 %v1794_v27  ;;  %v917_v36 = vpop.f32.mrb[39].mxu0  ;;  %1789 = vmatpush1.bf16.msra.mxu0 %v1788_v17  ;;  %v1206_v48 = vmax.f32 %v1001_v33, 0.0 }
 0x1f0   :  { %v1005_v37 = vadd.f32 %v1004_v35, %v2327_v30  ;;  %v918_v38 = vadd.f32 %v917_v36, %v2327_v30  ;;  %v1006_v40 = vpop.f32.mrb[39].mxu1  ;;  %1797 = vmatpush1.bf16.msra.mxu1 %v1796_v24 }
 0x1f1   :  { %v1211_v43 = vmax.f32 %v916_v34, 0.0  ;;  %v1007_v61 = vadd.f32 %v1006_v40, %v2327_v30 }
 0x1f2   :  { %v1213_v46 = vmax.f32 %v1005_v37, 0.0  ;;  %v1212_v47 = vmax.f32 %v918_v38, 0.0 }
 0x1f3   :  { %v1792_v22 = vpack.c.bf16 %v1211_v43, %v1203_v42  ;;  %v1214_v49 = vmax.f32 %v1007_v61, 0.0 }
 0x1f4   :  { %v1800_v50 = vpack.c.bf16 %v1213_v46, %v1205_v44  ;;  %v1790_v51 = vpack.c.bf16 %v1212_v47, %v1204_v45 }
 0x1f5   :  { %v1798_v54 = vpack.c.bf16 %v1214_v49, %v1206_v48 }
 0x1f6   :  { %1791 = vmatprep.subr.bf16.mxu0 %v1790_v51 }
 0x1f7   :  { %1799 = vmatprep.subr.bf16.mxu1 %v1798_v54  ;;  %1793 = vmatpush1.bf16.msra.mxu0 %v1792_v22 }
 0x1f8   :  { %1801 = vmatpush1.bf16.msra.mxu1 %v1800_v50  ;;  %v1224_v50 = vpop.permute.xlu0 %1223 }
 0x1fa   :  { %1686 = vmatmul.mubr.msk.f32.vlgmr.msra.gmra.mrb[48].mxu0 %vm249_vm12, %v2339_v55 }
 0x1fb   :  { %1687 = vmatmul.mubr.msk.f32.vlgmr.msra.gmra.mrb[48].mxu1 %vm249_vm12, %v2339_v55  ;;  %1435 = vmatprep.mubr.f32.mxu0 %v1849_v3 }
 0x1fc   :  { %1506 = vmatprep.mubr.f32.mxu1 %v1849_v3 }
 0x202   :  { %v1075_v56 = vpop.f32.mrb[40].mxu0 }
 0x203   :  { %v1164_v29 = vpop.f32.mrb[40].mxu1  ;;  %v1077_v8 = vpop.f32.mrb[41].mxu0  ;;  %v1076_v39 = vadd.f32 %v1075_v56, %v2312_v23 }
 0x204   :  { %v1166_v57 = vpop.f32.mrb[41].mxu1  ;;  %v1165_v59 = vadd.f32 %v1164_v29, %v2312_v23  ;;  %v1078_v62 = vadd.f32 %v1077_v8, %v2312_v23 }
 0x205   :  { %v1167_v0 = vadd.f32 %v1166_v57, %v2312_v23  ;;  %v1191_v7 = vmax.f32 %v1076_v39, 0.0 }
 0x206   :  { %v1081_v63 = vpop.f32.mrb[42].mxu0  ;;  %v1193_v11 = vmax.f32 %v1165_v59, 0.0  ;;  %v1192_v12 = vmax.f32 %v1078_v62, 0.0 }
 0x207   :  { %v1082_v58 = vadd.f32 %v1081_v63, %v2315_v60  ;;  %v1170_v2 = vpop.f32.mrb[42].mxu1  ;;  %v1083_v4 = vpop.f32.mrb[43].mxu0  ;;  %v1194_v15 = vmax.f32 %v1167_v0, 0.0 }
 0x208   :  { %v1171_v5 = vadd.f32 %v1170_v2, %v2315_v60  ;;  %v1084_v3 = vadd.f32 %v1083_v4, %v2315_v60  ;;  %v1172_v6 = vpop.f32.mrb[43].mxu1 }
 0x209   :  { %v1199_v9 = vmax.f32 %v1082_v58, 0.0  ;;  %v1173_v10 = vadd.f32 %v1172_v6, %v2315_v60 }
 0x20a   :  { %v1201_v53 = vmax.f32 %v1171_v5, 0.0  ;;  %v1200_v13 = vmax.f32 %v1084_v3, 0.0  ;;  %v1087_v14 = vpop.f32.mrb[44].mxu0 }
 0x20b   :  { %v1804_v23 = vpack.c.bf16 %v1199_v9, %v1191_v7  ;;  %v1202_v41 = vmax.f32 %v1173_v10, 0.0  ;;  %v1176_v16 = vpop.f32.mrb[44].mxu1  ;;  %v1089_v17 = vpop.f32.mrb[45].mxu0  ;;  %v1088_v25 = vadd.f32 %v1087_v14, %v2324_v21 }
 0x20c   :  { %v1812_v18 = vpack.c.bf16 %v1201_v53, %v1193_v11  ;;  %v1802_v19 = vpack.c.bf16 %v1200_v13, %v1192_v12  ;;  %v1178_v20 = vpop.f32.mrb[45].mxu1  ;;  %v1177_v26 = vadd.f32 %v1176_v16, %v2324_v21  ;;  %v1090_v60 = vadd.f32 %v1089_v17, %v2324_v21 }
 0x20d   :  { %v1810_v24 = vpack.c.bf16 %v1202_v41, %v1194_v15  ;;  %v1179_v28 = vadd.f32 %v1178_v20, %v2324_v21  ;;  %v1207_v36 = vmax.f32 %v1088_v25, 0.0 }
 0x20e   :  { %v1093_v27 = vpop.f32.mrb[46].mxu0  ;;  %1803 = vmatprep.subr.bf16.mxu0 %v1802_v19  ;;  %v1209_v40 = vmax.f32 %v1177_v26, 0.0  ;;  %v1208_v42 = vmax.f32 %v1090_v60, 0.0 }
 0x20f   :  { %v1094_v31 = vadd.f32 %v1093_v27, %v2327_v30  ;;  %v1182_v52 = vpop.f32.mrb[46].mxu1  ;;  %1811 = vmatprep.subr.bf16.mxu1 %v1810_v24  ;;  %v1095_v32 = vpop.f32.mrb[47].mxu0  ;;  %1805 = vmatpush1.bf16.msra.mxu0 %v1804_v23  ;;  %v1210_v61 = vmax.f32 %v1179_v28, 0.0 }
 0x210   :  { %v1183_v33 = vadd.f32 %v1182_v52, %v2327_v30  ;;  %v1096_v34 = vadd.f32 %v1095_v32, %v2327_v30  ;;  %v1184_v35 = vpop.f32.mrb[47].mxu1  ;;  %1813 = vmatpush1.bf16.msra.mxu1 %v1812_v18 }
 0x211   :  { %v1215_v37 = vmax.f32 %v1094_v31, 0.0  ;;  %v1185_v38 = vadd.f32 %v1184_v35, %v2327_v30  ;;  %v1852_v30 = vmov 1983009808  }
 0x212   :  { %v1217_v43 = vmax.f32 %v1183_v33, 0.0  ;;  %v1216_v21 = vmax.f32 %v1096_v34, 0.0  ;;  %v1524_v22 = vunpack.c.l.s4 %v1852_v30 }
 0x213   :  { %v1808_v44 = vpack.c.bf16 %v1215_v37, %v1207_v36  ;;  %v1218_v45 = vmax.f32 %v1185_v38, 0.0 }
 0x214   :  { %v1816_v46 = vpack.c.bf16 %v1217_v43, %v1209_v40  ;;  %v1806_v47 = vpack.c.bf16 %v1216_v21, %v1208_v42  ;;  %v1525_v49 = vunpack.c.0.s8 %v1524_v22 }
 0x215   :  { %v1814_v48 = vpack.c.bf16 %v1218_v45, %v1210_v61 }
 0x216   :  { %1807 = vmatprep.subr.bf16.mxu0 %v1806_v47  ;;  %v1528_v39 = vsub.s32 %v1525_v49, %v1894_v1 }
 0x217   :  { %1815 = vmatprep.subr.bf16.mxu1 %v1814_v48  ;;  %1809 = vmatpush1.bf16.msra.mxu0 %v1808_v44 }
 0x218   :  { %1817 = vmatpush1.bf16.msra.mxu1 %v1816_v46 }
 0x21a   :  { %1688 = vmatmul.mubr.msk.f32.vlgmr.msra.gmra.mrb[50].mxu0 %vm249_vm12, %v2339_v55 }
 0x21b   :  { %1689 = vmatmul.mubr.msk.f32.vlgmr.msra.gmra.mrb[50].mxu1 %vm249_vm12, %v2339_v55 }
 0x2cd   :  { %v1295_v51 = vpop.f32.mrb[48].mxu0 }
 0x2ce   :  { %v1296_v54 = vadd.f32 %v1295_v51, %v1224_v50  ;;  %v1366_v56 = vpop.f32.mrb[48].mxu1  ;;  %v1297_v29 = vpop.f32.mrb[49].mxu0 }
 0x2cf   :  { %v1367_v8 = vadd.f32 %v1366_v56, %v1224_v50  ;;  %v1298_v57 = vadd.f32 %v1297_v29, %v1224_v50  ;;  %v1368_v59 = vpop.f32.mrb[49].mxu1 }
 0x2d0   :  { %v1369_v62 = vadd.f32 %v1368_v59, %v1224_v50 }
 0x2d1   :  { %v1521_v63 = vcombine.low %v1296_v54, %v1298_v57 }
 0x2d2   :  { %v1522_v0 = vcombine.low %v1367_v8, %v1369_v62 }
 0x2d3   :  { %v1529_v58 = vrot.slane %v1521_v63, %v1528_v39 }
 0x2d4   :  { %v1536_v2 = vrot.slane %v1522_v0, %v1528_v39 }
 0x2d6   :  { %v1537_v4 = vcombine.low %v1529_v58, %v1536_v2 }
 0x2d8   :  { %1557 = vst [vmem:[#allocation2] sm:$0xff] %v1537_v4 }
 0x2ed   :  { %v1437_v55 = vpop.f32.mrb[50].mxu0 }
 0x2ee   :  { %v1438_v5 = vadd.f32 %v1437_v55, %v1224_v50  ;;  %v1508_v3 = vpop.f32.mrb[50].mxu1  ;;  %v1439_v6 = vpop.f32.mrb[51].mxu0 }
 0x2ef   :  { %v1509_v7 = vadd.f32 %v1508_v3, %v1224_v50  ;;  %v1440_v9 = vadd.f32 %v1439_v6, %v1224_v50  ;;  %v1510_v10 = vpop.f32.mrb[51].mxu1 }
 0x2f0   :  { %v1511_v11 = vadd.f32 %v1510_v10, %v1224_v50 }
 0x2f1   :  { %v1538_v12 = vcombine.low %v1438_v5, %v1440_v9 }
 0x2f2   :  { %v1539_v53 = vcombine.low %v1509_v7, %v1511_v11 }
 0x2f3   :  { %v1546_v13 = vrot.slane %v1538_v12, %v1528_v39 }
 0x2f4   :  { %v1553_v1 = vrot.slane %v1539_v53, %v1528_v39 }
 0x2f6   :  { %v1554_v14 = vcombine.low %v1546_v13, %v1553_v1 }
 0x2f8   :  { %1558 = vst [vmem:[#allocation2 + $0x8] sm:$0xff] %v1554_v14 }
 0x2f9   :  { %1836 = shalt.err (!%p1833_p4)
}
 0x2fa   :  { %s1837_s30 = scalar_lea.hbm %s2387_s7, 256 }
 0x2fb   :  { %p1838_p5 = scmp.ne.s32.totalorder %s2387_s7, %s1837_s30  ;;  %p1841_p6 = scmp.lt.u32.totalorder %s1837_s30, %s2387_s7 }
 0x2fd   :  { %p1843_p7 = pnand %p1841_p6, %p1838_p5 }
 0x2ff   :  { %1846 = shalt.err (!%p1843_p7)
}
 0x300   :  { %1568 = dma.vmem_to_hbm [thread:$0]  %s1566_s27, 256, %s2387_s7, [#allocation3]  }
 0x301   :  { %1847 = dma.done.wait [#allocation3], 256  }
 0x302   :  { %1848 = vsyncadd [#allocation3], 4294967040 }
 0x303   :  { %1572 = vsyncpa [#allocation3], 1 }

// kernel: tpu_custom_call.1
= control target key start
LH: loop header
LB: loop body
LE: loop exit
PB: predicated region body
PF: predicated region fallthrough
CT: control target
= control target key end

     0   :  { %v27_v0 = vlaneseq  ;;  %v1849_v3 = vmov 0.0   ;;  %v1850_v5 = vmov 0   ;;  %s2380_s0 = inlined_call_operand.vmem [shape: s32[2,1024], index: 0, kind: input, shape index: {}]   ;;  %s2381_s1 = inlined_call_operand.vmem [shape: f32[64,32], index: 1, kind: input, shape index: {}]   ;;  %s2382_s2 = inlined_call_operand.vmem [shape: f32[64,1], index: 2, kind: input, shape index: {}]   ;;  %s2383_s3 = inlined_call_operand.vmem [shape: f32[32,64], index: 3, kind: input, shape index: {}]   ;;  %s2384_s4 = inlined_call_operand.vmem [shape: f32[32,1], index: 4, kind: input, shape index: {}]   ;;  %s2385_s5 = inlined_call_operand.vmem [shape: f32[2,32], index: 5, kind: input, shape index: {}]   ;;  %s2386_s6 = inlined_call_operand.vmem [shape: f32[2,1], index: 6, kind: input, shape index: {}]   ;;  %s2387_s7 = inlined_call_operand.hbm [shape: f32[2,1024], index: 7, kind: output, shape index: {}]  }
   0x1   :  { %v1899_v2 = vld [vmem:[%s2380_s0] ss:$2 sm:$0xff]  ;;  %338 = vmatprep.mubr.f32.mxu0 %v1849_v3  ;;  %451 = vmatprep.mubr.f32.mxu1 %v1849_v3  ;;  %v1906_v4 = vld [vmem:[%s2380_s0 + $0x1] ss:$2 sm:$0xff]  ;;  %v203_v16 = vld [vmem:[%s2382_s2 + $0x10] sm:$0xff] }
   0x2   :  { %v1894_v1 = vshrl.u32 %v27_v0, 7  ;;  %1823 = vset.pattern.permute.xlu0 %v1850_v5  ;;  %v201_v6 = vld [vmem:[%s2382_s2] sm:$0xff]  ;;  %1824 = vset.pattern.permute.xlu1 %v1850_v5  ;;  %v202_v15 = vld [vmem:[%s2382_s2 + $0x8] sm:$0xff] }
   0x3   :  { %211 = vperm.xlu0 %1823, %v201_v6   ;;  %221 = vperm.xlu1 %1824, %v203_v16  }
   0x4   :  { %v1912_v7 = vadd.s32 8, %v1894_v1  ;;  %v37_v8 = vsub.s32 1, %v1894_v1  ;;  %v45_v9 = vsub.s32 3, %v1894_v1  ;;  %v33_v10 = vsub.s32 0, %v1894_v1 }
   0x5   :  { %v41_v11 = vsub.s32 2, %v1894_v1  ;;  %v53_v12 = vsub.s32 5, %v1894_v1  ;;  %v61_v13 = vsub.s32 7, %v1894_v1  ;;  %v49_v14 = vsub.s32 4, %v1894_v1 }
   0x6   :  { %v38_v17 = vrot.slane %v1899_v2, %v37_v8  ;;  %v46_v18 = vrot.slane %v1899_v2, %v45_v9  ;;  %v34_v19 = vrot.slane %v1899_v2, %v33_v10  ;;  %v120_v20 = vrot.slane %v1906_v4, %v37_v8 }
   0x7   :  { %v42_v21 = vrot.slane %v1899_v2, %v41_v11  ;;  %v128_v22 = vrot.slane %v1906_v4, %v45_v9  ;;  %v116_v23 = vrot.slane %v1906_v4, %v33_v10  ;;  %v124_v24 = vrot.slane %v1906_v4, %v41_v11  ;;  %216 = vperm.xlu0 %1823, %v202_v15  }
   0x8   :  { %vm64_vm0 = vcmp.eq.s32.totalorder %v1894_v1, %v38_v17  ;;  %vm72_vm1 = vcmp.eq.s32.totalorder %v1912_v7, %v38_v17  ;;  %vm66_vm2 = vcmp.eq.s32.totalorder %v1894_v1, %v46_v18  ;;  %vm74_vm3 = vcmp.eq.s32.totalorder %v1912_v7, %v46_v18 }
   0x9   :  { %12 = vsyncpa [#allocation3], 0  ;;  %vm63_vm5 = vcmp.eq.s32.totalorder %v1894_v1, %v34_v19  ;;  %vm71_vm6 = vcmp.eq.s32.totalorder %v1912_v7, %v34_v19  ;;  %vm65_vm7 = vcmp.eq.s32.totalorder %v1894_v1, %v42_v21  ;;  %vm73_vm8 = vcmp.eq.s32.totalorder %v1912_v7, %v42_v21  ;;  %v205_v25 = vld [vmem:[%s2382_s2 + $0x20] sm:$0xff]  ;;  %v204_v27 = vld [vmem:[%s2382_s2 + $0x18] sm:$0xff] }
   0xa   :  { %vm1690_vm4 = vmpackc.low %vm72_vm1, %vm64_vm0  ;;  %v1851_v26 = vmov 1.0|1.0   ;;  %vm146_vm10 = vcmp.eq.s32.totalorder %v1894_v1, %v120_v20  ;;  %vm154_vm11 = vcmp.eq.s32.totalorder %v1912_v7, %v120_v20  ;;  %vm148_vm13 = vcmp.eq.s32.totalorder %v1894_v1, %v128_v22  ;;  %226 = vperm.xlu1 %1824, %v204_v27   ;;  %v207_v35 = vld [vmem:[%s2382_s2 + $0x30] sm:$0xff]  ;;  %v2003_v36 = vld [vmem:[%s2381_s1] sm:$0xff] }
   0xb   :  { %1691 = vmatprep.subr.msk.bf16.mxu0 %vm1690_vm4, %v1851_v26  ;;  %vm1698_vm9 = vmpackc.low %vm74_vm3, %vm66_vm2  ;;  %vm156_vm14 = vcmp.eq.s32.totalorder %v1912_v7, %v128_v22  ;;  %vm145_vm15 = vcmp.eq.s32.totalorder %v1894_v1, %v116_v23  ;;  %vm153_vm0 = vcmp.eq.s32.totalorder %v1912_v7, %v116_v23  ;;  %v54_v28 = vrot.slane %v1899_v2, %v53_v12  ;;  %v2040_v39 = vld [vmem:[%s2381_s1 + $0x8] sm:$0xff]  ;;  %v794_v40 = vld [vmem:[%s2384_s4] sm:$0xff] }
   0xc   :  { %1699 = vmatprep.subr.msk.bf16.mxu1 %vm1698_vm9, %v1851_v26  ;;  %vm1692_vm12 = vmpackc.low %vm71_vm6, %vm63_vm5  ;;  %v62_v29 = vrot.slane %v1899_v2, %v61_v13  ;;  %v50_v30 = vrot.slane %v1899_v2, %v49_v14  ;;  %v57_v31 = vsub.s32 6, %v1894_v1  ;;  %231 = vperm.xlu0 %1823, %v205_v25   ;;  %vm147_vm3 = vcmp.eq.s32.totalorder %v1894_v1, %v124_v24  ;;  %v195_v41 = vld [vmem:[%s2381_s1 + $0x10] sm:$0xff]  ;;  %v206_v42 = vld [vmem:[%s2382_s2 + $0x28] sm:$0xff] }
   0xd   :  { %1693 = vmatpush1.bf16.msk.msra.mxu0 %vm1692_vm12, %v1851_v26  ;;  %vm1700_vm1 = vmpackc.low %vm73_vm8, %vm65_vm7  ;;  %vm155_vm4 = vcmp.eq.s32.totalorder %v1912_v7, %v124_v24  ;;  %vm68_vm6 = vcmp.eq.s32.totalorder %v1894_v1, %v54_v28  ;;  %vm76_vm7 = vcmp.eq.s32.totalorder %v1912_v7, %v54_v28  ;;  %v136_v32 = vrot.slane %v1906_v4, %v53_v12  ;;  %v796_v43 = vld [vmem:[%s2384_s4 + $0x10] sm:$0xff]  ;;  %v196_v44 = vld [vmem:[%s2381_s1 + $0x18] sm:$0xff] }
   0xe   :  { %1701 = vmatpush1.bf16.msk.msra.mxu1 %vm1700_vm1, %v1851_v26  ;;  %vm1694_vm2 = vmpackc.low %vm154_vm11, %vm146_vm10  ;;  %vm70_vm9 = vcmp.eq.s32.totalorder %v1894_v1, %v62_v29  ;;  %vm78_vm10 = vcmp.eq.s32.totalorder %v1912_v7, %v62_v29  ;;  %v58_v33 = vrot.slane %v1899_v2, %v57_v31  ;;  %v144_v34 = vrot.slane %v1906_v4, %v61_v13  ;;  %v208_v45 = vld [vmem:[%s2382_s2 + $0x38] sm:$0xff]  ;;  %v1220_v46 = vld [vmem:[%s2386_s6] sm:$0x3] }
   0xf   :  { %1695 = vmatprep.subr.msk.bf16.mxu0 %vm1694_vm2, %v1851_v26  ;;  %vm1702_vm5 = vmpackc.low %vm156_vm14, %vm148_vm13  ;;  %vm249_vm12 = vcmask 261120   ;;  %vm67_vm13 = vcmp.eq.s32.totalorder %v1894_v1, %v50_v30  ;;  %vm75_vm14 = vcmp.eq.s32.totalorder %v1912_v7, %v50_v30  ;;  %v132_v37 = vrot.slane %v1906_v4, %v49_v14  ;;  %236 = vperm.xlu1 %1824, %v206_v42   ;;  %v197_v47 = vld [vmem:[%s2381_s1 + $0x20] sm:$0xff]  ;;  %v795_v48 = vld [vmem:[%s2384_s4 + $0x8] sm:$0xff] }
  0x10   :  { %1703 = vmatprep.subr.msk.bf16.mxu1 %vm1702_vm5, %v1851_v26  ;;  %vm1696_vm8 = vmpackc.low %vm153_vm0, %vm145_vm15  ;;  %vm69_vm0 = vcmp.eq.s32.totalorder %v1894_v1, %v58_v33  ;;  %vm77_vm1 = vcmp.eq.s32.totalorder %v1912_v7, %v58_v33  ;;  %v140_v38 = vrot.slane %v1906_v4, %v57_v31  ;;  %241 = vperm.xlu0 %1823, %v207_v35   ;;  %v198_v49 = vld [vmem:[%s2381_s1 + $0x28] sm:$0xff]  ;;  %v797_v50 = vld [vmem:[%s2384_s4 + $0x18] sm:$0xff] }
  0x11   :  { %1697 = vmatpush1.bf16.msk.msra.mxu0 %vm1696_vm8, %v1851_v26  ;;  %vm1704_vm11 = vmpackc.low %vm155_vm4, %vm147_vm3  ;;  %vm150_vm3 = vcmp.eq.s32.totalorder %v1894_v1, %v136_v32  ;;  %vm158_vm4 = vcmp.eq.s32.totalorder %v1912_v7, %v136_v32  ;;  %v199_v51 = vld [vmem:[%s2381_s1 + $0x30] sm:$0xff]  ;;  %v200_v52 = vld [vmem:[%s2381_s1 + $0x38] sm:$0xff] }
  0x12   :  { %1705 = vmatpush1.bf16.msk.msra.mxu1 %vm1704_vm11, %v1851_v26  ;;  %vm1706_vm15 = vmpackc.low %vm76_vm7, %vm68_vm6  ;;  %vm152_vm6 = vcmp.eq.s32.totalorder %v1894_v1, %v144_v34  ;;  %vm160_vm7 = vcmp.eq.s32.totalorder %v1912_v7, %v144_v34 }
  0x13   :  { %1707 = vmatprep.subr.msk.bf16.mxu0 %vm1706_vm15, %v1851_v26  ;;  %vm1714_vm2 = vmpackc.low %vm78_vm10, %vm70_vm9  ;;  %vm149_vm9 = vcmp.eq.s32.totalorder %v1894_v1, %v132_v37  ;;  %vm157_vm10 = vcmp.eq.s32.totalorder %v1912_v7, %v132_v37  ;;  %246 = vperm.xlu1 %1824, %v208_v45  }
  0x14   :  { %1614 = vmatmul.mubr.msk.f32.vlgmr.msra.gmra.mrb[0].mxu0 %vm249_vm12, %v2003_v36  ;;  %1715 = vmatprep.subr.msk.bf16.mxu1 %vm1714_vm2, %v1851_v26  ;;  %vm1708_vm5 = vmpackc.low %vm75_vm14, %vm67_vm13  ;;  %vm151_vm13 = vcmp.eq.s32.totalorder %v1894_v1, %v140_v38  ;;  %vm159_vm14 = vcmp.eq.s32.totalorder %v1912_v7, %v140_v38  ;;  %vm818_vm2 = vcmask 523264  }
  0x15   :  { %1630 = vmatmul.mubr.msk.f32.vlgmr.msra.gmra.mrb[0].mxu1 %vm249_vm12, %v2003_v36  ;;  %1709 = vmatpush1.bf16.msk.msra.mxu0 %vm1708_vm5, %v1851_v26  ;;  %vm1716_vm8 = vmpackc.low %vm77_vm1, %vm69_vm0 }
  0x16   :  { %1717 = vmatpush1.bf16.msk.msra.mxu1 %vm1716_vm8, %v1851_v26  ;;  %344 = vmatprep.mubr.f32.mxu0 %v1849_v3  ;;  %vm1710_vm11 = vmpackc.low %vm158_vm4, %vm150_vm3 }
  0x17   :  { %457 = vmatprep.mubr.f32.mxu1 %v1849_v3  ;;  %1711 = vmatprep.subr.msk.bf16.mxu0 %vm1710_vm11, %v1851_v26  ;;  %vm1718_vm15 = vmpackc.low %vm160_vm7, %vm152_vm6 }
  0x18   :  { %1615 = vmatmul.mubr.msk.f32.gmra.mrb[2].mxu0 %vm249_vm12, %v2040_v39  ;;  %1719 = vmatprep.subr.msk.bf16.mxu1 %vm1718_vm15, %v1851_v26  ;;  %vm1712_vm0 = vmpackc.low %vm157_vm10, %vm149_vm9 }
  0x19   :  { %1631 = vmatmul.mubr.msk.f32.gmra.mrb[2].mxu1 %vm249_vm12, %v2040_v39  ;;  %350 = vmatprep.mubr.f32.mxu0 %v1849_v3  ;;  %vm1720_vm1 = vmpackc.low %vm159_vm14, %vm151_vm13 }
  0x1a   :  { %463 = vmatprep.mubr.f32.mxu1 %v1849_v3  ;;  %1713 = vmatpush1.bf16.msk.msra.mxu0 %vm1712_vm0, %v1851_v26 }
  0x1b   :  { %1721 = vmatpush1.bf16.msk.msra.mxu1 %vm1720_vm1, %v1851_v26  ;;  %800 = vperm.xlu0 %1823, %v794_v40  }
  0x1c   :  { %1616 = vmatmul.mubr.msk.f32.gmra.mrb[4].mxu0 %vm249_vm12, %v195_v41  ;;  %805 = vperm.xlu1 %1824, %v795_v48  }
  0x1d   :  { %1632 = vmatmul.mubr.msk.f32.gmra.mrb[4].mxu1 %vm249_vm12, %v195_v41  ;;  %356 = vmatprep.mubr.f32.mxu0 %v1849_v3 }
  0x1e   :  { %469 = vmatprep.mubr.f32.mxu1 %v1849_v3 }
  0x1f   :  { %810 = vperm.xlu0 %1823, %v796_v43  }
  0x20   :  { %1617 = vmatmul.mubr.msk.f32.gmra.mrb[6].mxu0 %vm249_vm12, %v196_v44  ;;  %815 = vperm.xlu1 %1824, %v797_v50  }
  0x21   :  { %1633 = vmatmul.mubr.msk.f32.gmra.mrb[6].mxu1 %vm249_vm12, %v196_v44  ;;  %362 = vmatprep.mubr.f32.mxu0 %v1849_v3 }
  0x22   :  { %475 = vmatprep.mubr.f32.mxu1 %v1849_v3 }
  0x23   :  { %1223 = vperm.xlu0 %1823, %v1220_v46  }
  0x24   :  { %1618 = vmatmul.mubr.msk.f32.gmra.mrb[8].mxu0 %vm249_vm12, %v197_v47 }
  0x25   :  { %1634 = vmatmul.mubr.msk.f32.gmra.mrb[8].mxu1 %vm249_vm12, %v197_v47  ;;  %368 = vmatprep.mubr.f32.mxu0 %v1849_v3 }
  0x26   :  { %481 = vmatprep.mubr.f32.mxu1 %v1849_v3 }
  0x28   :  { %1619 = vmatmul.mubr.msk.f32.gmra.mrb[10].mxu0 %vm249_vm12, %v198_v49 }
  0x29   :  { %1635 = vmatmul.mubr.msk.f32.gmra.mrb[10].mxu1 %vm249_vm12, %v198_v49  ;;  %374 = vmatprep.mubr.f32.mxu0 %v1849_v3 }
  0x2a   :  { %487 = vmatprep.mubr.f32.mxu1 %v1849_v3 }
  0x2c   :  { %1620 = vmatmul.mubr.msk.f32.gmra.mrb[12].mxu0 %vm249_vm12, %v199_v51 }
  0x2d   :  { %1636 = vmatmul.mubr.msk.f32.gmra.mrb[12].mxu1 %vm249_vm12, %v199_v51  ;;  %380 = vmatprep.mubr.f32.mxu0 %v1849_v3 }
  0x2e   :  { %493 = vmatprep.mubr.f32.mxu1 %v1849_v3 }
  0x30   :  { %1621 = vmatmul.mubr.msk.f32.gmra.mrb[14].mxu0 %vm249_vm12, %v200_v52 }
  0x31   :  { %1637 = vmatmul.mubr.msk.f32.gmra.mrb[14].mxu1 %vm249_vm12, %v200_v52  ;;  %564 = vmatprep.mubr.f32.mxu0 %v1849_v3 }
  0x32   :  { %677 = vmatprep.mubr.f32.mxu1 %v1849_v3 }
  0x34   :  { %1646 = vmatmul.mubr.msk.f32.vlgmr.msra.gmra.mrb[16].mxu0 %vm249_vm12, %v2003_v36 }
  0x35   :  { %1662 = vmatmul.mubr.msk.f32.vlgmr.msra.gmra.mrb[16].mxu1 %vm249_vm12, %v2003_v36  ;;  %570 = vmatprep.mubr.f32.mxu0 %v1849_v3 }
  0x36   :  { %683 = vmatprep.mubr.f32.mxu1 %v1849_v3 }
  0x38   :  { %1647 = vmatmul.mubr.msk.f32.gmra.mrb[18].mxu0 %vm249_vm12, %v2040_v39 }
  0x39   :  { %1663 = vmatmul.mubr.msk.f32.gmra.mrb[18].mxu1 %vm249_vm12, %v2040_v39  ;;  %576 = vmatprep.mubr.f32.mxu0 %v1849_v3 }
  0x3a   :  { %689 = vmatprep.mubr.f32.mxu1 %v1849_v3 }
  0x3c   :  { %1648 = vmatmul.mubr.msk.f32.gmra.mrb[20].mxu0 %vm249_vm12, %v195_v41 }
  0x3d   :  { %1664 = vmatmul.mubr.msk.f32.gmra.mrb[20].mxu1 %vm249_vm12, %v195_v41  ;;  %582 = vmatprep.mubr.f32.mxu0 %v1849_v3 }
  0x3e   :  { %695 = vmatprep.mubr.f32.mxu1 %v1849_v3 }
  0x40   :  { %1649 = vmatmul.mubr.msk.f32.gmra.mrb[22].mxu0 %vm249_vm12, %v196_v44 }
  0x41   :  { %1665 = vmatmul.mubr.msk.f32.gmra.mrb[22].mxu1 %vm249_vm12, %v196_v44  ;;  %588 = vmatprep.mubr.f32.mxu0 %v1849_v3 }
  0x42   :  { %701 = vmatprep.mubr.f32.mxu1 %v1849_v3 }
  0x44   :  { %1650 = vmatmul.mubr.msk.f32.gmra.mrb[24].mxu0 %vm249_vm12, %v197_v47 }
  0x45   :  { %1666 = vmatmul.mubr.msk.f32.gmra.mrb[24].mxu1 %vm249_vm12, %v197_v47  ;;  %594 = vmatprep.mubr.f32.mxu0 %v1849_v3 }
  0x46   :  { %707 = vmatprep.mubr.f32.mxu1 %v1849_v3 }
  0x48   :  { %1651 = vmatmul.mubr.msk.f32.gmra.mrb[26].mxu0 %vm249_vm12, %v198_v49 }
  0x49   :  { %1667 = vmatmul.mubr.msk.f32.gmra.mrb[26].mxu1 %vm249_vm12, %v198_v49  ;;  %600 = vmatprep.mubr.f32.mxu0 %v1849_v3 }
  0x4a   :  { %713 = vmatprep.mubr.f32.mxu1 %v1849_v3 }
  0x4c   :  { %1652 = vmatmul.mubr.msk.f32.gmra.mrb[28].mxu0 %vm249_vm12, %v199_v51 }
  0x4d   :  { %1668 = vmatmul.mubr.msk.f32.gmra.mrb[28].mxu1 %vm249_vm12, %v199_v51  ;;  %606 = vmatprep.mubr.f32.mxu0 %v1849_v3 }
  0x4e   :  { %719 = vmatprep.mubr.f32.mxu1 %v1849_v3 }
  0x50   :  { %1653 = vmatmul.mubr.msk.f32.gmra.mrb[30].mxu0 %vm249_vm12, %v200_v52 }
  0x51   :  { %1669 = vmatmul.mubr.msk.f32.gmra.mrb[30].mxu1 %vm249_vm12, %v200_v52  ;;  %895 = vmatprep.mubr.f32.mxu0 %v1849_v3 }
  0x52   :  { %984 = vmatprep.mubr.f32.mxu1 %v1849_v3 }
  0x82   :  { %v2164_v53 = vpop.permute.xlu0 %211  ;;  %v2170_v61 = vpop.permute.xlu1 %221 }
  0x86   :  { %v2166_v57 = vpop.permute.xlu0 %216 }
  0x89   :  { %v2178_v23 = vpop.permute.xlu1 %226 }
  0x8b   :  { %v2188_v41 = vpop.permute.xlu0 %231 }
  0x8e   :  { %v2190_v52 = vpop.permute.xlu1 %236 }
  0xe7   :  { %v340_v54 = vpop.f32.mrb[0].mxu0 }
  0xe8   :  { %v453_v55 = vpop.f32.mrb[0].mxu1  ;;  %v342_v56 = vpop.f32.mrb[1].mxu0  ;;  %v341_v59 = vadd.f32 %v340_v54, %v2164_v53 }
  0xe9   :  { %v455_v58 = vpop.f32.mrb[1].mxu1  ;;  %v454_v60 = vadd.f32 %v453_v55, %v2164_v53  ;;  %v343_v62 = vadd.f32 %v342_v56, %v2164_v53 }
  0xea   :  { %v456_v0 = vadd.f32 %v455_v58, %v2164_v53  ;;  %v726_v9 = vmax.f32 %v341_v59, 0.0 }
  0xeb   :  { %v346_v63 = vpop.f32.mrb[2].mxu0  ;;  %v728_v12 = vmax.f32 %v454_v60, 0.0  ;;  %v727_v13 = vmax.f32 %v343_v62, 0.0 }
  0xec   :  { %v347_v2 = vadd.f32 %v346_v63, %v2166_v57  ;;  %v459_v4 = vpop.f32.mrb[2].mxu1  ;;  %v348_v5 = vpop.f32.mrb[3].mxu0  ;;  %v729_v17 = vmax.f32 %v456_v0, 0.0 }
  0xed   :  { %v460_v6 = vadd.f32 %v459_v4, %v2166_v57  ;;  %v349_v7 = vadd.f32 %v348_v5, %v2166_v57  ;;  %v461_v8 = vpop.f32.mrb[3].mxu1 }
  0xee   :  { %v734_v10 = vmax.f32 %v347_v2, 0.0  ;;  %v462_v11 = vadd.f32 %v461_v8, %v2166_v57 }
  0xef   :  { %v736_v14 = vmax.f32 %v460_v6, 0.0  ;;  %v735_v15 = vmax.f32 %v349_v7, 0.0  ;;  %v352_v16 = vpop.f32.mrb[4].mxu0 }
  0xf0   :  { %v1724_v18 = vpack.c.bf16 %v734_v10, %v726_v9  ;;  %v737_v19 = vmax.f32 %v462_v11, 0.0  ;;  %v465_v20 = vpop.f32.mrb[4].mxu1  ;;  %v354_v21 = vpop.f32.mrb[5].mxu0  ;;  %v353_v27 = vadd.f32 %v352_v16, %v2170_v61 }
  0xf1   :  { %v1740_v22 = vpack.c.bf16 %v736_v14, %v728_v12  ;;  %v1722_v24 = vpack.c.bf16 %v735_v15, %v727_v13  ;;  %v467_v25 = vpop.f32.mrb[5].mxu1  ;;  %v466_v28 = vadd.f32 %v465_v20, %v2170_v61  ;;  %v355_v29 = vadd.f32 %v354_v21, %v2170_v61 }
  0xf2   :  { %v1738_v26 = vpack.c.bf16 %v737_v19, %v729_v17  ;;  %v468_v31 = vadd.f32 %v467_v25, %v2170_v61  ;;  %v742_v38 = vmax.f32 %v353_v27, 0.0 }
  0xf3   :  { %v358_v30 = vpop.f32.mrb[6].mxu0  ;;  %1723 = vmatprep.subr.bf16.mxu0 %v1722_v24  ;;  %v744_v42 = vmax.f32 %v466_v28, 0.0  ;;  %v743_v43 = vmax.f32 %v355_v29, 0.0  ;;  %v2203_v29 = vpop.permute.xlu1 %246 }
  0xf4   :  { %v359_v32 = vadd.f32 %v358_v30, %v2178_v23  ;;  %v471_v33 = vpop.f32.mrb[6].mxu1  ;;  %1739 = vmatprep.subr.bf16.mxu1 %v1738_v26  ;;  %v360_v34 = vpop.f32.mrb[7].mxu0  ;;  %1725 = vmatpush1.bf16.msra.mxu0 %v1724_v18  ;;  %v745_v47 = vmax.f32 %v468_v31, 0.0 }
  0xf5   :  { %v472_v35 = vadd.f32 %v471_v33, %v2178_v23  ;;  %v361_v36 = vadd.f32 %v360_v34, %v2178_v23  ;;  %v473_v37 = vpop.f32.mrb[7].mxu1  ;;  %1741 = vmatpush1.bf16.msra.mxu1 %v1740_v22  ;;  %v2200_v22 = vpop.permute.xlu0 %241 }
  0xf6   :  { %v750_v39 = vmax.f32 %v359_v32, 0.0  ;;  %v474_v40 = vadd.f32 %v473_v37, %v2178_v23 }
  0xf7   :  { %v752_v44 = vmax.f32 %v472_v35, 0.0  ;;  %v751_v45 = vmax.f32 %v361_v36, 0.0  ;;  %v364_v46 = vpop.f32.mrb[8].mxu0 }
  0xf8   :  { %v1728_v48 = vpack.c.bf16 %v750_v39, %v742_v38  ;;  %v753_v49 = vmax.f32 %v474_v40, 0.0  ;;  %v477_v50 = vpop.f32.mrb[8].mxu1  ;;  %v366_v51 = vpop.f32.mrb[9].mxu0  ;;  %v365_v59 = vadd.f32 %v364_v46, %v2188_v41 }
  0xf9   :  { %v1744_v54 = vpack.c.bf16 %v752_v44, %v744_v42  ;;  %v1726_v55 = vpack.c.bf16 %v751_v45, %v743_v43  ;;  %v479_v56 = vpop.f32.mrb[9].mxu1  ;;  %v478_v60 = vadd.f32 %v477_v50, %v2188_v41  ;;  %v367_v62 = vadd.f32 %v366_v51, %v2188_v41 }
  0xfa   :  { %v1742_v58 = vpack.c.bf16 %v753_v49, %v745_v47  ;;  %v480_v0 = vadd.f32 %v479_v56, %v2188_v41  ;;  %v758_v9 = vmax.f32 %v365_v59, 0.0 }
  0xfb   :  { %v370_v63 = vpop.f32.mrb[10].mxu0  ;;  %1727 = vmatprep.subr.bf16.mxu0 %v1726_v55  ;;  %v760_v12 = vmax.f32 %v478_v60, 0.0  ;;  %v759_v13 = vmax.f32 %v367_v62, 0.0 }
  0xfc   :  { %v371_v2 = vadd.f32 %v370_v63, %v2190_v52  ;;  %v483_v4 = vpop.f32.mrb[10].mxu1  ;;  %1743 = vmatprep.subr.bf16.mxu1 %v1742_v58  ;;  %v372_v5 = vpop.f32.mrb[11].mxu0  ;;  %1729 = vmatpush1.bf16.msra.mxu0 %v1728_v48  ;;  %v761_v17 = vmax.f32 %v480_v0, 0.0 }
  0xfd   :  { %v484_v6 = vadd.f32 %v483_v4, %v2190_v52  ;;  %v373_v7 = vadd.f32 %v372_v5, %v2190_v52  ;;  %v485_v8 = vpop.f32.mrb[11].mxu1  ;;  %1745 = vmatpush1.bf16.msra.mxu1 %v1744_v54 }
  0xfe   :  { %v766_v10 = vmax.f32 %v371_v2, 0.0  ;;  %v486_v11 = vadd.f32 %v485_v8, %v2190_v52  ;;  %v2220_v8 = vld [vmem:[%s2383_s3] sm:$0xff] }
  0xff   :  { %v768_v14 = vmax.f32 %v484_v6, 0.0  ;;  %v767_v15 = vmax.f32 %v373_v7, 0.0  ;;  %v376_v16 = vpop.f32.mrb[12].mxu0 }
 0x100   :  { %v1732_v18 = vpack.c.bf16 %v766_v10, %v758_v9  ;;  %v769_v19 = vmax.f32 %v486_v11, 0.0  ;;  %v489_v20 = vpop.f32.mrb[12].mxu1  ;;  %v378_v21 = vpop.f32.mrb[13].mxu0  ;;  %v377_v28 = vadd.f32 %v376_v16, %v2200_v22 }
 0x101   :  { %v1748_v24 = vpack.c.bf16 %v768_v14, %v760_v12  ;;  %v1730_v25 = vpack.c.bf16 %v767_v15, %v759_v13  ;;  %v491_v26 = vpop.f32.mrb[13].mxu1  ;;  %v490_v30 = vadd.f32 %v489_v20, %v2200_v22  ;;  %v379_v31 = vadd.f32 %v378_v21, %v2200_v22 }
 0x102   :  { %v1746_v27 = vpack.c.bf16 %v769_v19, %v761_v17  ;;  %v492_v33 = vadd.f32 %v491_v26, %v2200_v22  ;;  %v774_v40 = vmax.f32 %v377_v28, 0.0 }
 0x103   :  { %v382_v32 = vpop.f32.mrb[14].mxu0  ;;  %1731 = vmatprep.subr.bf16.mxu0 %v1730_v25  ;;  %v776_v44 = vmax.f32 %v490_v30, 0.0  ;;  %v775_v45 = vmax.f32 %v379_v31, 0.0 }
 0x104   :  { %v383_v34 = vadd.f32 %v382_v32, %v2203_v29  ;;  %v495_v35 = vpop.f32.mrb[14].mxu1  ;;  %1747 = vmatprep.subr.bf16.mxu1 %v1746_v27  ;;  %v384_v36 = vpop.f32.mrb[15].mxu0  ;;  %1733 = vmatpush1.bf16.msra.mxu0 %v1732_v18  ;;  %v777_v49 = vmax.f32 %v492_v33, 0.0 }
 0x105   :  { %v496_v37 = vadd.f32 %v495_v35, %v2203_v29  ;;  %v385_v38 = vadd.f32 %v384_v36, %v2203_v29  ;;  %v497_v39 = vpop.f32.mrb[15].mxu1  ;;  %1749 = vmatpush1.bf16.msra.mxu1 %v1748_v24 }
 0x106   :  { %v782_v42 = vmax.f32 %v383_v34, 0.0  ;;  %v498_v43 = vadd.f32 %v497_v39, %v2203_v29  ;;  %v2248_v39 = vld [vmem:[%s2383_s3 + $0x10] sm:$0xff] }
 0x107   :  { %v784_v46 = vmax.f32 %v496_v37, 0.0  ;;  %v783_v47 = vmax.f32 %v385_v38, 0.0  ;;  %v566_v48 = vpop.f32.mrb[16].mxu0 }
 0x108   :  { %v1736_v50 = vpack.c.bf16 %v782_v42, %v774_v40  ;;  %v785_v51 = vmax.f32 %v498_v43, 0.0  ;;  %v679_v54 = vpop.f32.mrb[16].mxu1  ;;  %v568_v55 = vpop.f32.mrb[17].mxu0  ;;  %v567_v62 = vadd.f32 %v566_v48, %v2164_v53 }
 0x109   :  { %v1752_v56 = vpack.c.bf16 %v784_v46, %v776_v44  ;;  %v1734_v58 = vpack.c.bf16 %v783_v47, %v775_v45  ;;  %v681_v59 = vpop.f32.mrb[17].mxu1  ;;  %v680_v63 = vadd.f32 %v679_v54, %v2164_v53  ;;  %v569_v0 = vadd.f32 %v568_v55, %v2164_v53 }
 0x10a   :  { %v1750_v60 = vpack.c.bf16 %v785_v51, %v777_v49  ;;  %v682_v4 = vadd.f32 %v681_v59, %v2164_v53  ;;  %v730_v12 = vmax.f32 %v567_v62, 0.0 }
 0x10b   :  { %v572_v2 = vpop.f32.mrb[18].mxu0  ;;  %1735 = vmatprep.subr.bf16.mxu0 %v1734_v58  ;;  %v732_v14 = vmax.f32 %v680_v63, 0.0  ;;  %v731_v15 = vmax.f32 %v569_v0, 0.0  ;;  %v2263_v58 = vld [vmem:[%s2383_s3 + $0x18] sm:$0xff] }
 0x10c   :  { %v573_v5 = vadd.f32 %v572_v2, %v2166_v57  ;;  %v685_v6 = vpop.f32.mrb[18].mxu1  ;;  %1751 = vmatprep.subr.bf16.mxu1 %v1750_v60  ;;  %v574_v7 = vpop.f32.mrb[19].mxu0  ;;  %1737 = vmatpush1.bf16.msra.mxu0 %v1736_v50  ;;  %v733_v19 = vmax.f32 %v682_v4, 0.0 }
 0x10d   :  { %v686_v9 = vadd.f32 %v685_v6, %v2166_v57  ;;  %v575_v10 = vadd.f32 %v574_v7, %v2166_v57  ;;  %v687_v11 = vpop.f32.mrb[19].mxu1  ;;  %1753 = vmatpush1.bf16.msra.mxu1 %v1752_v56 }
 0x10e   :  { %v738_v53 = vmax.f32 %v573_v5, 0.0  ;;  %v688_v13 = vadd.f32 %v687_v11, %v2166_v57  ;;  %v2233_v57 = vld [vmem:[%s2383_s3 + $0x8] sm:$0xff] }
 0x10f   :  { %v740_v16 = vmax.f32 %v686_v9, 0.0  ;;  %v739_v17 = vmax.f32 %v575_v10, 0.0  ;;  %v578_v18 = vpop.f32.mrb[20].mxu0  ;;  %1670 = vmatmul.mubr.msk.f32.vlgmr.msra.gmra.mrb[32].mxu0 %vm818_vm2, %v2220_v8 }
 0x110   :  { %v1756_v20 = vpack.c.bf16 %v738_v53, %v730_v12  ;;  %v741_v21 = vmax.f32 %v688_v13, 0.0  ;;  %v691_v24 = vpop.f32.mrb[20].mxu1  ;;  %1674 = vmatmul.mubr.msk.f32.vlgmr.msra.gmra.mrb[32].mxu1 %vm818_vm2, %v2220_v8  ;;  %v580_v25 = vpop.f32.mrb[21].mxu0  ;;  %901 = vmatprep.mubr.f32.mxu0 %v1849_v3  ;;  %v579_v31 = vadd.f32 %v578_v18, %v2170_v61 }
 0x111   :  { %v1772_v26 = vpack.c.bf16 %v740_v16, %v732_v14  ;;  %v1754_v27 = vpack.c.bf16 %v739_v17, %v731_v15  ;;  %v693_v28 = vpop.f32.mrb[21].mxu1  ;;  %990 = vmatprep.mubr.f32.mxu1 %v1849_v3  ;;  %v692_v32 = vadd.f32 %v691_v24, %v2170_v61  ;;  %v581_v33 = vadd.f32 %v580_v25, %v2170_v61 }
 0x112   :  { %v1770_v30 = vpack.c.bf16 %v741_v21, %v733_v19  ;;  %v694_v35 = vadd.f32 %v693_v28, %v2170_v61  ;;  %v746_v61 = vmax.f32 %v579_v31, 0.0 }
 0x113   :  { %v584_v34 = vpop.f32.mrb[22].mxu0  ;;  %1671 = vmatmul.mubr.msk.f32.gmra.mrb[34].mxu0 %vm818_vm2, %v2233_v57  ;;  %1755 = vmatprep.subr.bf16.mxu0 %v1754_v27  ;;  %v748_v46 = vmax.f32 %v692_v32, 0.0  ;;  %v747_v47 = vmax.f32 %v581_v33, 0.0 }
 0x114   :  { %v585_v36 = vadd.f32 %v584_v34, %v2178_v23  ;;  %v697_v37 = vpop.f32.mrb[22].mxu1  ;;  %1675 = vmatmul.mubr.msk.f32.gmra.mrb[34].mxu1 %vm818_vm2, %v2233_v57  ;;  %1771 = vmatprep.subr.bf16.mxu1 %v1770_v30  ;;  %v586_v38 = vpop.f32.mrb[23].mxu0  ;;  %v749_v51 = vmax.f32 %v694_v35, 0.0 }
 0x115   :  { %v698_v40 = vadd.f32 %v697_v37, %v2178_v23  ;;  %v587_v42 = vadd.f32 %v586_v38, %v2178_v23  ;;  %v699_v43 = vpop.f32.mrb[23].mxu1  ;;  %1757 = vmatpush1.bf16.msra.mxu0 %v1756_v20  ;;  %1773 = vmatpush1.bf16.msra.mxu1 %v1772_v26 }
 0x116   :  { %v754_v44 = vmax.f32 %v585_v36, 0.0  ;;  %v700_v45 = vadd.f32 %v699_v43, %v2178_v23  ;;  %907 = vmatprep.mubr.f32.mxu0 %v1849_v3  ;;  %996 = vmatprep.mubr.f32.mxu1 %v1849_v3 }
 0x117   :  { %v756_v48 = vmax.f32 %v698_v40, 0.0  ;;  %v755_v49 = vmax.f32 %v587_v42, 0.0  ;;  %v590_v50 = vpop.f32.mrb[24].mxu0  ;;  %1672 = vmatmul.mubr.msk.f32.gmra.mrb[36].mxu0 %vm818_vm2, %v2248_v39 }
 0x118   :  { %v1760_v54 = vpack.c.bf16 %v754_v44, %v746_v61  ;;  %v757_v55 = vmax.f32 %v700_v45, 0.0  ;;  %v703_v56 = vpop.f32.mrb[24].mxu1  ;;  %1676 = vmatmul.mubr.msk.f32.gmra.mrb[36].mxu1 %vm818_vm2, %v2248_v39  ;;  %v592_v23 = vpop.f32.mrb[25].mxu0  ;;  %913 = vmatprep.mubr.f32.mxu0 %v1849_v3  ;;  %v591_v0 = vadd.f32 %v590_v50, %v2188_v41 }
 0x119   :  { %v1776_v59 = vpack.c.bf16 %v756_v48, %v748_v46  ;;  %v1758_v60 = vpack.c.bf16 %v755_v49, %v747_v47  ;;  %v705_v62 = vpop.f32.mrb[25].mxu1  ;;  %1002 = vmatprep.mubr.f32.mxu1 %v1849_v3  ;;  %v704_v2 = vadd.f32 %v703_v56, %v2188_v41  ;;  %v593_v4 = vadd.f32 %v592_v23, %v2188_v41  ;;  %v2312_v23 = vpop.permute.xlu0 %800 }
 0x11a   :  { %v1774_v63 = vpack.c.bf16 %v757_v55, %v749_v51  ;;  %v706_v6 = vadd.f32 %v705_v62, %v2188_v41  ;;  %v762_v13 = vmax.f32 %v591_v0, 0.0 }
 0x11b   :  { %v596_v5 = vpop.f32.mrb[26].mxu0  ;;  %1673 = vmatmul.mubr.msk.f32.gmra.mrb[38].mxu0 %vm818_vm2, %v2263_v58  ;;  %1759 = vmatprep.subr.bf16.mxu0 %v1758_v60  ;;  %v764_v41 = vmax.f32 %v704_v2, 0.0  ;;  %v763_v16 = vmax.f32 %v593_v4, 0.0  ;;  %v2315_v60 = vpop.permute.xlu1 %805 }
 0x11c   :  { %v597_v7 = vadd.f32 %v596_v5, %v2190_v52  ;;  %v709_v9 = vpop.f32.mrb[26].mxu1  ;;  %1677 = vmatmul.mubr.msk.f32.gmra.mrb[38].mxu1 %vm818_vm2, %v2263_v58  ;;  %1775 = vmatprep.subr.bf16.mxu1 %v1774_v63  ;;  %v598_v10 = vpop.f32.mrb[27].mxu0  ;;  %v765_v20 = vmax.f32 %v706_v6, 0.0 }
 0x11d   :  { %v710_v11 = vadd.f32 %v709_v9, %v2190_v52  ;;  %v599_v12 = vadd.f32 %v598_v10, %v2190_v52  ;;  %v711_v53 = vpop.f32.mrb[27].mxu1  ;;  %1761 = vmatpush1.bf16.msra.mxu0 %v1760_v54  ;;  %1777 = vmatpush1.bf16.msra.mxu1 %v1776_v59 }
 0x11e   :  { %v770_v14 = vmax.f32 %v597_v7, 0.0  ;;  %v712_v15 = vadd.f32 %v711_v53, %v2190_v52  ;;  %1073 = vmatprep.mubr.f32.mxu0 %v1849_v3  ;;  %1162 = vmatprep.mubr.f32.mxu1 %v1849_v3 }
 0x11f   :  { %v772_v17 = vmax.f32 %v710_v11, 0.0  ;;  %v771_v18 = vmax.f32 %v599_v12, 0.0  ;;  %v602_v19 = vpop.f32.mrb[28].mxu0 }
 0x120   :  { %v1764_v21 = vpack.c.bf16 %v770_v14, %v762_v13  ;;  %v773_v24 = vmax.f32 %v712_v15, 0.0  ;;  %v715_v25 = vpop.f32.mrb[28].mxu1  ;;  %v604_v26 = vpop.f32.mrb[29].mxu0  ;;  %v603_v52 = vadd.f32 %v602_v19, %v2200_v22 }
 0x121   :  { %v1780_v27 = vpack.c.bf16 %v772_v17, %v764_v41  ;;  %v1762_v28 = vpack.c.bf16 %v771_v18, %v763_v16  ;;  %v717_v30 = vpop.f32.mrb[29].mxu1  ;;  %v716_v32 = vadd.f32 %v715_v25, %v2200_v22  ;;  %v605_v33 = vadd.f32 %v604_v26, %v2200_v22 }
 0x122   :  { %v1778_v31 = vpack.c.bf16 %v773_v24, %v765_v20  ;;  %v718_v35 = vadd.f32 %v717_v30, %v2200_v22  ;;  %v778_v61 = vmax.f32 %v603_v52, 0.0  ;;  %v2327_v30 = vpop.permute.xlu1 %815 }
 0x123   :  { %v608_v34 = vpop.f32.mrb[30].mxu0  ;;  %1763 = vmatprep.subr.bf16.mxu0 %v1762_v28  ;;  %v780_v46 = vmax.f32 %v716_v32, 0.0  ;;  %v779_v47 = vmax.f32 %v605_v33, 0.0 }
 0x124   :  { %v609_v36 = vadd.f32 %v608_v34, %v2203_v29  ;;  %v721_v37 = vpop.f32.mrb[30].mxu1  ;;  %1779 = vmatprep.subr.bf16.mxu1 %v1778_v31  ;;  %v610_v38 = vpop.f32.mrb[31].mxu0  ;;  %1765 = vmatpush1.bf16.msra.mxu0 %v1764_v21  ;;  %v781_v49 = vmax.f32 %v718_v35, 0.0 }
 0x125   :  { %v722_v40 = vadd.f32 %v721_v37, %v2203_v29  ;;  %v611_v42 = vadd.f32 %v610_v38, %v2203_v29  ;;  %v723_v43 = vpop.f32.mrb[31].mxu1  ;;  %1781 = vmatpush1.bf16.msra.mxu1 %v1780_v27  ;;  %v2324_v21 = vpop.permute.xlu0 %810 }
 0x126   :  { %v786_v44 = vmax.f32 %v609_v36, 0.0  ;;  %v724_v45 = vadd.f32 %v723_v43, %v2203_v29 }
 0x127   :  { %v788_v48 = vmax.f32 %v722_v40, 0.0  ;;  %v787_v22 = vmax.f32 %v611_v42, 0.0 }
 0x128   :  { %v1768_v50 = vpack.c.bf16 %v786_v44, %v778_v61  ;;  %v789_v51 = vmax.f32 %v724_v45, 0.0 }
 0x129   :  { %v1784_v54 = vpack.c.bf16 %v788_v48, %v780_v46  ;;  %v1766_v55 = vpack.c.bf16 %v787_v22, %v779_v47 }
 0x12a   :  { %v1782_v56 = vpack.c.bf16 %v789_v51, %v781_v49 }
 0x12b   :  { %1767 = vmatprep.subr.bf16.mxu0 %v1766_v55  ;;  %v2339_v55 = vld [vmem:[%s2385_s5] sm:$0x3]  ;;  %s1853_s5 = smov [#allocation2]  }
 0x12c   :  { %1783 = vmatprep.subr.bf16.mxu1 %v1782_v56  ;;  %1769 = vmatpush1.bf16.msra.mxu0 %v1768_v50  ;;  %s1565_s27 = sshll.u32 %s1853_s5, 4  ;;  %s1566_s27 = int_to_ptr.vmem [resolvable:$true] %s1565_s27 }
 0x12d   :  { %1785 = vmatpush1.bf16.msra.mxu1 %v1784_v54  ;;  %s1825_s28 = scalar_lea.vmem %s1566_s27, 256  ;;  %p1830_p1 = scmp.lt.s32.totalorder %s1566_s27, %s1566_s27 }
 0x12e   :  { %p1826_p0 = scmp.ne.s32.totalorder %s1566_s27, %s1825_s28  ;;  %p1831_p2 = scmp.lt.s32.totalorder %s1825_s28, %s1825_s28 }
 0x12f   :  { %1678 = vmatmul.mubr.msk.f32.vlgmr.msra.gmra.mrb[40].mxu0 %vm818_vm2, %v2220_v8 }
 0x130   :  { %1682 = vmatmul.mubr.msk.f32.vlgmr.msra.gmra.mrb[40].mxu1 %vm818_vm2, %v2220_v8  ;;  %1079 = vmatprep.mubr.f32.mxu0 %v1849_v3  ;;  %p1832_p3 = por %p1831_p2, %p1830_p1 }
 0x131   :  { %1168 = vmatprep.mubr.f32.mxu1 %v1849_v3 }
 0x132   :  { %p1833_p4 = pnand %p1832_p3, %p1826_p0 }
 0x133   :  { %1679 = vmatmul.mubr.msk.f32.gmra.mrb[42].mxu0 %vm818_vm2, %v2233_v57 }
 0x134   :  { %1683 = vmatmul.mubr.msk.f32.gmra.mrb[42].mxu1 %vm818_vm2, %v2233_v57  ;;  %1085 = vmatprep.mubr.f32.mxu0 %v1849_v3 }
 0x135   :  { %1174 = vmatprep.mubr.f32.mxu1 %v1849_v3 }
 0x137   :  { %1680 = vmatmul.mubr.msk.f32.gmra.mrb[44].mxu0 %vm818_vm2, %v2248_v39 }
 0x138   :  { %1684 = vmatmul.mubr.msk.f32.gmra.mrb[44].mxu1 %vm818_vm2, %v2248_v39  ;;  %1091 = vmatprep.mubr.f32.mxu0 %v1849_v3 }
 0x139   :  { %1180 = vmatprep.mubr.f32.mxu1 %v1849_v3 }
 0x13b   :  { %1681 = vmatmul.mubr.msk.f32.gmra.mrb[46].mxu0 %vm818_vm2, %v2263_v58 }
 0x13c   :  { %1685 = vmatmul.mubr.msk.f32.gmra.mrb[46].mxu1 %vm818_vm2, %v2263_v58  ;;  %1293 = vmatprep.mubr.f32.mxu0 %v1849_v3 }
 0x13d   :  { %1364 = vmatprep.mubr.f32.mxu1 %v1849_v3 }
 0x1e2   :  { %v897_v29 = vpop.f32.mrb[32].mxu0 }
 0x1e3   :  { %v986_v8 = vpop.f32.mrb[32].mxu1  ;;  %v899_v57 = vpop.f32.mrb[33].mxu0  ;;  %v898_v59 = vadd.f32 %v897_v29, %v2312_v23 }
 0x1e4   :  { %v988_v39 = vpop.f32.mrb[33].mxu1  ;;  %v987_v62 = vadd.f32 %v986_v8, %v2312_v23  ;;  %v900_v63 = vadd.f32 %v899_v57, %v2312_v23 }
 0x1e5   :  { %v989_v58 = vadd.f32 %v988_v39, %v2312_v23  ;;  %v1187_v10 = vmax.f32 %v898_v59, 0.0 }
 0x1e6   :  { %v903_v0 = vpop.f32.mrb[34].mxu0  ;;  %v1189_v53 = vmax.f32 %v987_v62, 0.0  ;;  %v1188_v13 = vmax.f32 %v900_v63, 0.0 }
 0x1e7   :  { %v904_v2 = vadd.f32 %v903_v0, %v2315_v60  ;;  %v992_v4 = vpop.f32.mrb[34].mxu1  ;;  %v905_v5 = vpop.f32.mrb[35].mxu0  ;;  %v1190_v16 = vmax.f32 %v989_v58, 0.0 }
 0x1e8   :  { %v993_v6 = vadd.f32 %v992_v4, %v2315_v60  ;;  %v906_v7 = vadd.f32 %v905_v5, %v2315_v60  ;;  %v994_v9 = vpop.f32.mrb[35].mxu1 }
 0x1e9   :  { %v1195_v11 = vmax.f32 %v904_v2, 0.0  ;;  %v995_v12 = vadd.f32 %v994_v9, %v2315_v60 }
 0x1ea   :  { %v1197_v14 = vmax.f32 %v993_v6, 0.0  ;;  %v1196_v15 = vmax.f32 %v906_v7, 0.0  ;;  %v909_v41 = vpop.f32.mrb[36].mxu0 }
 0x1eb   :  { %v1788_v17 = vpack.c.bf16 %v1195_v11, %v1187_v10  ;;  %v1198_v18 = vmax.f32 %v995_v12, 0.0  ;;  %v998_v19 = vpop.f32.mrb[36].mxu1  ;;  %v911_v20 = vpop.f32.mrb[37].mxu0  ;;  %v910_v28 = vadd.f32 %v909_v41, %v2324_v21 }
 0x1ec   :  { %v1796_v24 = vpack.c.bf16 %v1197_v14, %v1189_v53  ;;  %v1786_v25 = vpack.c.bf16 %v1196_v15, %v1188_v13  ;;  %v1000_v26 = vpop.f32.mrb[37].mxu1  ;;  %v999_v31 = vadd.f32 %v998_v19, %v2324_v21  ;;  %v912_v52 = vadd.f32 %v911_v20, %v2324_v21 }
 0x1ed   :  { %v1794_v27 = vpack.c.bf16 %v1198_v18, %v1190_v16  ;;  %v1001_v33 = vadd.f32 %v1000_v26, %v2324_v21  ;;  %v1203_v42 = vmax.f32 %v910_v28, 0.0 }
 0x1ee   :  { %v915_v32 = vpop.f32.mrb[38].mxu0  ;;  %1787 = vmatprep.subr.bf16.mxu0 %v1786_v25  ;;  %v1205_v44 = vmax.f32 %v999_v31, 0.0  ;;  %v1204_v45 = vmax.f32 %v912_v52, 0.0 }
 0x1ef   :  { %v916_v34 = vadd.f32 %v915_v32, %v2327_v30  ;;  %v1004_v35 = vpop.f32.mrb[38].mxu1  ;;  %1795 = vmatprep.subr.bf16.mxu1 %v1794_v27  ;;  %v917_v36 = vpop.f32.mrb[39].mxu0  ;;  %1789 = vmatpush1.bf16.msra.mxu0 %v1788_v17  ;;  %v1206_v48 = vmax.f32 %v1001_v33, 0.0 }
 0x1f0   :  { %v1005_v37 = vadd.f32 %v1004_v35, %v2327_v30  ;;  %v918_v38 = vadd.f32 %v917_v36, %v2327_v30  ;;  %v1006_v40 = vpop.f32.mrb[39].mxu1  ;;  %1797 = vmatpush1.bf16.msra.mxu1 %v1796_v24 }
 0x1f1   :  { %v1211_v43 = vmax.f32 %v916_v34, 0.0  ;;  %v1007_v61 = vadd.f32 %v1006_v40, %v2327_v30 }
 0x1f2   :  { %v1213_v46 = vmax.f32 %v1005_v37, 0.0  ;;  %v1212_v47 = vmax.f32 %v918_v38, 0.0 }
 0x1f3   :  { %v1792_v22 = vpack.c.bf16 %v1211_v43, %v1203_v42  ;;  %v1214_v49 = vmax.f32 %v1007_v61, 0.0 }
 0x1f4   :  { %v1800_v50 = vpack.c.bf16 %v1213_v46, %v1205_v44  ;;  %v1790_v51 = vpack.c.bf16 %v1212_v47, %v1204_v45 }
 0x1f5   :  { %v1798_v54 = vpack.c.bf16 %v1214_v49, %v1206_v48 }
 0x1f6   :  { %1791 = vmatprep.subr.bf16.mxu0 %v1790_v51 }
 0x1f7   :  { %1799 = vmatprep.subr.bf16.mxu1 %v1798_v54  ;;  %1793 = vmatpush1.bf16.msra.mxu0 %v1792_v22 }
 0x1f8   :  { %1801 = vmatpush1.bf16.msra.mxu1 %v1800_v50  ;;  %v1224_v50 = vpop.permute.xlu0 %1223 }
 0x1fa   :  { %1686 = vmatmul.mubr.msk.f32.vlgmr.msra.gmra.mrb[48].mxu0 %vm249_vm12, %v2339_v55 }
 0x1fb   :  { %1687 = vmatmul.mubr.msk.f32.vlgmr.msra.gmra.mrb[48].mxu1 %vm249_vm12, %v2339_v55  ;;  %1435 = vmatprep.mubr.f32.mxu0 %v1849_v3 }
 0x1fc   :  { %1506 = vmatprep.mubr.f32.mxu1 %v1849_v3 }
 0x202   :  { %v1075_v56 = vpop.f32.mrb[40].mxu0 }
 0x203   :  { %v1164_v29 = vpop.f32.mrb[40].mxu1  ;;  %v1077_v8 = vpop.f32.mrb[41].mxu0  ;;  %v1076_v39 = vadd.f32 %v1075_v56, %v2312_v23 }
 0x204   :  { %v1166_v57 = vpop.f32.mrb[41].mxu1  ;;  %v1165_v59 = vadd.f32 %v1164_v29, %v2312_v23  ;;  %v1078_v62 = vadd.f32 %v1077_v8, %v2312_v23 }
 0x205   :  { %v1167_v0 = vadd.f32 %v1166_v57, %v2312_v23  ;;  %v1191_v7 = vmax.f32 %v1076_v39, 0.0 }
 0x206   :  { %v1081_v63 = vpop.f32.mrb[42].mxu0  ;;  %v1193_v11 = vmax.f32 %v1165_v59, 0.0  ;;  %v1192_v12 = vmax.f32 %v1078_v62, 0.0 }
 0x207   :  { %v1082_v58 = vadd.f32 %v1081_v63, %v2315_v60  ;;  %v1170_v2 = vpop.f32.mrb[42].mxu1  ;;  %v1083_v4 = vpop.f32.mrb[43].mxu0  ;;  %v1194_v15 = vmax.f32 %v1167_v0, 0.0 }
 0x208   :  { %v1171_v5 = vadd.f32 %v1170_v2, %v2315_v60  ;;  %v1084_v3 = vadd.f32 %v1083_v4, %v2315_v60  ;;  %v1172_v6 = vpop.f32.mrb[43].mxu1 }
 0x209   :  { %v1199_v9 = vmax.f32 %v1082_v58, 0.0  ;;  %v1173_v10 = vadd.f32 %v1172_v6, %v2315_v60 }
 0x20a   :  { %v1201_v53 = vmax.f32 %v1171_v5, 0.0  ;;  %v1200_v13 = vmax.f32 %v1084_v3, 0.0  ;;  %v1087_v14 = vpop.f32.mrb[44].mxu0 }
 0x20b   :  { %v1804_v23 = vpack.c.bf16 %v1199_v9, %v1191_v7  ;;  %v1202_v41 = vmax.f32 %v1173_v10, 0.0  ;;  %v1176_v16 = vpop.f32.mrb[44].mxu1  ;;  %v1089_v17 = vpop.f32.mrb[45].mxu0  ;;  %v1088_v25 = vadd.f32 %v1087_v14, %v2324_v21 }
 0x20c   :  { %v1812_v18 = vpack.c.bf16 %v1201_v53, %v1193_v11  ;;  %v1802_v19 = vpack.c.bf16 %v1200_v13, %v1192_v12  ;;  %v1178_v20 = vpop.f32.mrb[45].mxu1  ;;  %v1177_v26 = vadd.f32 %v1176_v16, %v2324_v21  ;;  %v1090_v60 = vadd.f32 %v1089_v17, %v2324_v21 }
 0x20d   :  { %v1810_v24 = vpack.c.bf16 %v1202_v41, %v1194_v15  ;;  %v1179_v28 = vadd.f32 %v1178_v20, %v2324_v21  ;;  %v1207_v36 = vmax.f32 %v1088_v25, 0.0 }
 0x20e   :  { %v1093_v27 = vpop.f32.mrb[46].mxu0  ;;  %1803 = vmatprep.subr.bf16.mxu0 %v1802_v19  ;;  %v1209_v40 = vmax.f32 %v1177_v26, 0.0  ;;  %v1208_v42 = vmax.f32 %v1090_v60, 0.0 }
 0x20f   :  { %v1094_v31 = vadd.f32 %v1093_v27, %v2327_v30  ;;  %v1182_v52 = vpop.f32.mrb[46].mxu1  ;;  %1811 = vmatprep.subr.bf16.mxu1 %v1810_v24  ;;  %v1095_v32 = vpop.f32.mrb[47].mxu0  ;;  %1805 = vmatpush1.bf16.msra.mxu0 %v1804_v23  ;;  %v1210_v61 = vmax.f32 %v1179_v28, 0.0 }
 0x210   :  { %v1183_v33 = vadd.f32 %v1182_v52, %v2327_v30  ;;  %v1096_v34 = vadd.f32 %v1095_v32, %v2327_v30  ;;  %v1184_v35 = vpop.f32.mrb[47].mxu1  ;;  %1813 = vmatpush1.bf16.msra.mxu1 %v1812_v18 }
 0x211   :  { %v1215_v37 = vmax.f32 %v1094_v31, 0.0  ;;  %v1185_v38 = vadd.f32 %v1184_v35, %v2327_v30  ;;  %v1852_v30 = vmov 1983009808  }
 0x212   :  { %v1217_v43 = vmax.f32 %v1183_v33, 0.0  ;;  %v1216_v21 = vmax.f32 %v1096_v34, 0.0  ;;  %v1524_v22 = vunpack.c.l.s4 %v1852_v30 }
 0x213   :  { %v1808_v44 = vpack.c.bf16 %v1215_v37, %v1207_v36  ;;  %v1218_v45 = vmax.f32 %v1185_v38, 0.0 }
 0x214   :  { %v1816_v46 = vpack.c.bf16 %v1217_v43, %v1209_v40  ;;  %v1806_v47 = vpack.c.bf16 %v1216_v21, %v1208_v42  ;;  %v1525_v49 = vunpack.c.0.s8 %v1524_v22 }
 0x215   :  { %v1814_v48 = vpack.c.bf16 %v1218_v45, %v1210_v61 }
 0x216   :  { %1807 = vmatprep.subr.bf16.mxu0 %v1806_v47  ;;  %v1528_v39 = vsub.s32 %v1525_v49, %v1894_v1 }
 0x217   :  { %1815 = vmatprep.subr.bf16.mxu1 %v1814_v48  ;;  %1809 = vmatpush1.bf16.msra.mxu0 %v1808_v44 }
 0x218   :  { %1817 = vmatpush1.bf16.msra.mxu1 %v1816_v46 }
 0x21a   :  { %1688 = vmatmul.mubr.msk.f32.vlgmr.msra.gmra.mrb[50].mxu0 %vm249_vm12, %v2339_v55 }
 0x21b   :  { %1689 = vmatmul.mubr.msk.f32.vlgmr.msra.gmra.mrb[50].mxu1 %vm249_vm12, %v2339_v55 }
 0x2cd   :  { %v1295_v51 = vpop.f32.mrb[48].mxu0 }
 0x2ce   :  { %v1296_v54 = vadd.f32 %v1295_v51, %v1224_v50  ;;  %v1366_v56 = vpop.f32.mrb[48].mxu1  ;;  %v1297_v29 = vpop.f32.mrb[49].mxu0 }
 0x2cf   :  { %v1367_v8 = vadd.f32 %v1366_v56, %v1224_v50  ;;  %v1298_v57 = vadd.f32 %v1297_v29, %v1224_v50  ;;  %v1368_v59 = vpop.f32.mrb[49].mxu1 }
 0x2d0   :  { %v1369_v62 = vadd.f32 %v1368_v59, %v1224_v50 }
 0x2d1   :  { %v1521_v63 = vcombine.low %v1296_v54, %v1298_v57 }
 0x2d2   :  { %v1522_v0 = vcombine.low %v1367_v8, %v1369_v62 }
 0x2d3   :  { %v1529_v58 = vrot.slane %v1521_v63, %v1528_v39 }
 0x2d4   :  { %v1536_v2 = vrot.slane %v1522_v0, %v1528_v39 }
 0x2d6   :  { %v1537_v4 = vcombine.low %v1529_v58, %v1536_v2 }
 0x2d8   :  { %1557 = vst [vmem:[#allocation2] sm:$0xff] %v1537_v4 }
 0x2ed   :  { %v1437_v55 = vpop.f32.mrb[50].mxu0 }
 0x2ee   :  { %v1438_v5 = vadd.f32 %v1437_v55, %v1224_v50  ;;  %v1508_v3 = vpop.f32.mrb[50].mxu1  ;;  %v1439_v6 = vpop.f32.mrb[51].mxu0 }
 0x2ef   :  { %v1509_v7 = vadd.f32 %v1508_v3, %v1224_v50  ;;  %v1440_v9 = vadd.f32 %v1439_v6, %v1224_v50  ;;  %v1510_v10 = vpop.f32.mrb[51].mxu1 }
 0x2f0   :  { %v1511_v11 = vadd.f32 %v1510_v10, %v1224_v50 }
 0x2f1   :  { %v1538_v12 = vcombine.low %v1438_v5, %v1440_v9 }
 0x2f2   :  { %v1539_v53 = vcombine.low %v1509_v7, %v1511_v11 }
 0x2f3   :  { %v1546_v13 = vrot.slane %v1538_v12, %v1528_v39 }
 0x2f4   :  { %v1553_v1 = vrot.slane %v1539_v53, %v1528_v39 }
 0x2f6   :  { %v1554_v14 = vcombine.low %v1546_v13, %v1553_v1 }
 0x2f8   :  { %1558 = vst [vmem:[#allocation2 + $0x8] sm:$0xff] %v1554_v14 }
 0x2f9   :  { %1836 = shalt.err (!%p1833_p4)
}
 0x2fa   :  { %s1837_s30 = scalar_lea.hbm %s2387_s7, 256 }
 0x2fb   :  { %p1838_p5 = scmp.ne.s32.totalorder %s2387_s7, %s1837_s30  ;;  %p1841_p6 = scmp.lt.u32.totalorder %s1837_s30, %s2387_s7 }
 0x2fd   :  { %p1843_p7 = pnand %p1841_p6, %p1838_p5 }
 0x2ff   :  { %1846 = shalt.err (!%p1843_p7)
}
 0x300   :  { %1568 = dma.vmem_to_hbm [thread:$0]  %s1566_s27, 256, %s2387_s7, [#allocation3]  }
 0x301   :  { %1847 = dma.done.wait [#allocation3], 256  }
 0x302   :  { %1848 = vsyncadd [#allocation3], 4294967040 }
 0x303   :  { %1572 = vsyncpa [#allocation3], 1 }

</bundles_post_ra>
